<compile_context>
chip_gen: v5e
topology: v5e:2x2
jax: 0.10.0
libtpu: 0.0.40
codegen_flags: <defaults>
</compile_context>

<pallas_src>
import functools

import numpy as np
import jax
import jax.numpy as jnp
from jax import lax
from jax.experimental import pallas as pl
from jax.experimental.pallas import tpu as pltpu


def _round_up(x, m):
    return ((x + m - 1) // m) * m


def _pick_vmem_limit():
    """Per-generation VMEM cap (~75% of physical): ~96 MiB on v5e/v6e, ~48 MiB on v7x."""
    try:
        cap = int(pltpu.get_tpu_info().vmem_capacity_bytes)
    except Exception:
        cap = 64 * 1024 * 1024
    return max(int(cap * 0.75), 32 * 1024 * 1024)


# ---------------------------------------------------------------------------
# Fused kernel.  grid = (2, n_tiles):
#   pass p=0 : note encode + combined windowed segment-sum pooling
#              (+ group encoders on the last note tile, into VMEM scratch)
#   pass p=1 : span beat/measure hidden states back to each note
# ---------------------------------------------------------------------------
def _fused_kernel(
    # scalar prefetch (SMEM)
    b_start_ref, m_start_ref,          # (n_tiles,) int32 aligned window starts
    # inputs
    bid_row_ref, mid_row_ref,          # (1, TN)  int32 segment ids (-1 = pad)
    bid_col_ref, mid_col_ref,          # (TN, 1)  int32 segment ids (-1 = pad)
    x_ref,                             # (TN, F)  bf16
    wn_ref, bn_ref,                    # (F, Hp)  bf16, (1, Hp)  f32
    wb_ref, bb_ref,                    # (Hp,HBp) bf16, (1, HBp) f32
    wm_ref, bm_ref,                    # (Hp,HMp) bf16, (1, HMp) f32
    invb_ref, invm_ref,                # (NBp,1), (NMp,1) f32 inverse counts
    # outputs (bf16, tiled over notes; inactive pass targets a dummy tile)
    note_h_ref,                        # (TN, Hp)
    beat_span_ref,                     # (TN, HBp)
    meas_span_ref,                     # (TN, HMp)
    # scratch (persist across the whole grid)
    pooled_b_ref, pooled_m_ref,        # (NBp, Hp), (NMp, Hp)  f32 accumulators
    beat_h_ref, meas_h_ref,            # (NBp, HBp), (NMp, HMp) f32 group hidden
    *, wb_win, wm_win,
):
    p = pl.program_id(0)
    i = pl.program_id(1)
    n_tiles = pl.num_programs(1)

    sb = pl.multiple_of(b_start_ref[i], 8)      # 8-aligned beat window start
    sm = pl.multiple_of(m_start_ref[i], 8)      # 8-aligned measure window start

    @pl.when(jnp.logical_and(p == 0, i == 0))
    def _init():
        pooled_b_ref[...] = jnp.zeros_like(pooled_b_ref)
        pooled_m_ref[...] = jnp.zeros_like(pooled_m_ref)

    # -------------------- pass 0: encode + pool --------------------
    @pl.when(p == 0)
    def _encode_and_pool():
        # note-level encoding (bf16 MXU operands, f32 accumulate, VPU relu)
        nh = jnp.dot(x_ref[...], wn_ref[...], preferred_element_type=jnp.float32)
        nh = jnp.maximum(nh + bn_ref[...], 0.0)
        nh_bf = nh.astype(jnp.bfloat16)
        note_h_ref[...] = nh_bf

        tn = nh.shape[0]
        w_tot = wb_win + wm_win

        # Stacked beat+measure one-hot: rows [0, wb_win) match beat ids in the
        # window [sb, sb+wb_win); rows [wb_win, w_tot) match measure ids in
        # [sm, sm+wm_win).  Pad ids (-1) never match (window starts >= 0).
        rows = lax.broadcasted_iota(jnp.int32, (w_tot, tn), 0)
        is_beat = rows < wb_win
        ids = jnp.where(is_beat, bid_row_ref[...], mid_row_ref[...])      # (w_tot, TN)
        tgt = jnp.where(is_beat, rows + sb, rows - wb_win + sm)           # (w_tot, TN)
        onehot = (tgt == ids).astype(jnp.float32).astype(jnp.bfloat16)

        # one MXU matmul for both pooled windows, then two aligned RMWs
        contrib = jnp.dot(onehot, nh_bf, preferred_element_type=jnp.float32)  # (w_tot, Hp)
        pooled_b_ref[pl.ds(sb, wb_win), :] = (
            pooled_b_ref[pl.ds(sb, wb_win), :] + contrib[:wb_win, :])
        pooled_m_ref[pl.ds(sm, wm_win), :] = (
            pooled_m_ref[pl.ds(sm, wm_win), :] + contrib[wb_win:, :])

    # group encoders once all note tiles are accumulated (into VMEM scratch)
    @pl.when(jnp.logical_and(p == 0, i == n_tiles - 1))
    def _group_encode():
        pb = (pooled_b_ref[...] * invb_ref[...]).astype(jnp.bfloat16)   # mean pool
        beat_h_ref[...] = jnp.maximum(
            jnp.dot(pb, wb_ref[...], preferred_element_type=jnp.float32) + bb_ref[...],
            0.0)
        pm = (pooled_m_ref[...] * invm_ref[...]).astype(jnp.bfloat16)
        meas_h_ref[...] = jnp.maximum(
            jnp.dot(pm, wm_ref[...], preferred_element_type=jnp.float32) + bm_ref[...],
            0.0)

    # -------------------- pass 1: span (windowed gather) --------------------
    @pl.when(p == 1)
    def _span():
        def gather(start, ids_col, src_ref, out_ref, win):
            tn = ids_col.shape[0]
            cols = lax.broadcasted_iota(jnp.int32, (tn, win), 1) + start
            onehot = (cols == ids_col).astype(jnp.float32).astype(jnp.bfloat16)
            window = src_ref[pl.ds(start, win), :].astype(jnp.bfloat16)   # (win, H*)
            out_ref[...] = jnp.dot(
                onehot, window, preferred_element_type=jnp.float32
            ).astype(out_ref.dtype)

        gather(sb, bid_col_ref[...], beat_h_ref, beat_span_ref, wb_win)
        gather(sm, mid_col_ref[...], meas_h_ref, meas_span_ref, wm_win)


# ---------------------------------------------------------------------------
# Host-side helpers
# ---------------------------------------------------------------------------
def _host_segments(ids, n_notes, n_pad, tn):
    """Pads segment ids, computes per-tile 8-aligned group-window starts, the
    static window width, padded group count, and inverse group counts."""
    ids = np.asarray(ids, dtype=np.int32).reshape(-1)
    assert ids.shape[0] == n_notes
    n_groups = int(ids.max()) + 1

    padded = np.full((n_pad,), -1, np.int32)
    padded[:n_notes] = ids

    n_tiles = n_pad // tn
    starts = np.zeros((n_tiles,), np.int32)
    span = 1
    for t in range(n_tiles):
        seg = padded[t * tn:(t + 1) * tn]
        seg = seg[seg >= 0]
        if seg.size:
            lo = (int(seg.min()) // 8) * 8
            starts[t] = lo
            span = max(span, int(seg.max()) - lo + 1)
    win = _round_up(span, 8)
    ngp = _round_up(max(n_groups, int(starts.max()) + win), 8)

    counts = np.bincount(ids, minlength=ngp).astype(np.float32)
    inv = (1.0 / np.maximum(counts, 1.0)).reshape(ngp, 1)
    return padded, starts, win, ngp, inv


def _pad2(a, rows, cols):
    a = jnp.asarray(a, jnp.float32)
    return jnp.pad(a, ((0, rows - a.shape[0]), (0, cols - a.shape[1])))


def transformer_note_forward(x, beat_numbers, measure_numbers, params, *, tile_notes=512):
    """x: (1, num_notes, F) f32; beat/measure_numbers: int arrays of len num_notes."""
    assert x.ndim == 3 and x.shape[0] == 1
    assert tile_notes % 128 == 0
    wn, bn, wb, bb, wm, bm = params

    n_notes, in_feat = x.shape[1], x.shape[2]
    h, hb, hm = wn.shape[1], wb.shape[1], wm.shape[1]
    hp, hbp, hmp = _round_up(h, 128), _round_up(hb, 128), _round_up(hm, 128)

    tn = int(tile_notes)
    n_pad = _round_up(max(n_notes, tn), tn)
    n_tiles = n_pad // tn
    out_rows = (n_tiles + 1) * tn           # last tile row is a throw-away dummy

    bid, b_start, wb_win, nbp, inv_b = _host_segments(beat_numbers, n_notes, n_pad, tn)
    mid, m_start, wm_win, nmp, inv_m = _host_segments(measure_numbers, n_notes, n_pad, tn)

    xn = jnp.pad(jnp.asarray(x[0], jnp.float32),
                 ((0, n_pad - n_notes), (0, 0))).astype(jnp.bfloat16)
    bid_row = jnp.asarray(bid).reshape(1, n_pad)
    mid_row = jnp.asarray(mid).reshape(1, n_pad)
    bid_col = jnp.asarray(bid).reshape(n_pad, 1)
    mid_col = jnp.asarray(mid).reshape(n_pad, 1)

    wn_p = _pad2(wn, in_feat, hp).astype(jnp.bfloat16)
    bn_p = _pad2(jnp.reshape(jnp.asarray(bn), (1, -1)), 1, hp)
    wb_p = _pad2(wb, hp, hbp).astype(jnp.bfloat16)
    bb_p = _pad2(jnp.reshape(jnp.asarray(bb), (1, -1)), 1, hbp)
    wm_p = _pad2(wm, hp, hmp).astype(jnp.bfloat16)
    bm_p = _pad2(jnp.reshape(jnp.asarray(bm), (1, -1)), 1, hmp)

    # Index maps (p = pass, i = note tile).  Inactive blocks are steered to a
    # constant block (inputs) or to the dummy output tile (index n_tiles).
    grid_spec = pltpu.PrefetchScalarGridSpec(
        num_scalar_prefetch=2,
        grid=(2, n_tiles),
        in_specs=[
            pl.BlockSpec((1, tn), lambda p, i, bs, ms: (0, i * (1 - p))),        # beat ids row
            pl.BlockSpec((1, tn), lambda p, i, bs, ms: (0, i * (1 - p))),        # measure ids row
            pl.BlockSpec((tn, 1), lambda p, i, bs, ms: (i * p, 0)),              # beat ids col
            pl.BlockSpec((tn, 1), lambda p, i, bs, ms: (i * p, 0)),              # measure ids col
            pl.BlockSpec((tn, in_feat), lambda p, i, bs, ms: (i * (1 - p), 0)),  # x tile
            pl.BlockSpec((in_feat, hp), lambda p, i, bs, ms: (0, 0)),            # Wn
            pl.BlockSpec((1, hp), lambda p, i, bs, ms: (0, 0)),                  # bn
            pl.BlockSpec((hp, hbp), lambda p, i, bs, ms: (0, 0)),                # Wb
            pl.BlockSpec((1, hbp), lambda p, i, bs, ms: (0, 0)),                 # bb
            pl.BlockSpec((hp, hmp), lambda p, i, bs, ms: (0, 0)),                # Wm
            pl.BlockSpec((1, hmp), lambda p, i, bs, ms: (0, 0)),                 # bm
            pl.BlockSpec((nbp, 1), lambda p, i, bs, ms: (0, 0)),                 # 1/count beats
            pl.BlockSpec((nmp, 1), lambda p, i, bs, ms: (0, 0)),                 # 1/count measures
        ],
        out_specs=(
            pl.BlockSpec((tn, hp),  lambda p, i, bs, ms: (i * (1 - p) + n_tiles * p, 0)),
            pl.BlockSpec((tn, hbp), lambda p, i, bs, ms: (i * p + n_tiles * (1 - p), 0)),
            pl.BlockSpec((tn, hmp), lambda p, i, bs, ms: (i * p + n_tiles * (1 - p), 0)),
        ),
        scratch_shapes=[
            pltpu.VMEM((nbp, hp), jnp.float32),     # pooled beat sums
            pltpu.VMEM((nmp, hp), jnp.float32),     # pooled measure sums
            pltpu.VMEM((nbp, hbp), jnp.float32),    # beat hidden (resident)
            pltpu.VMEM((nmp, hmp), jnp.float32),    # measure hidden (resident)
        ],
    )

    note_h_pad, beat_span_pad, meas_span_pad = pl.pallas_call(
        functools.partial(_fused_kernel, wb_win=wb_win, wm_win=wm_win),
        grid_spec=grid_spec,
        out_shape=(
            jax.ShapeDtypeStruct((out_rows, hp), jnp.bfloat16),
            jax.ShapeDtypeStruct((out_rows, hbp), jnp.bfloat16),
            jax.ShapeDtypeStruct((out_rows, hmp), jnp.bfloat16),
        ),
        compiler_params=pltpu.CompilerParams(
            # resident accumulators / pass-ordering -> both axes sequential
            dimension_semantics=("arbitrary", "arbitrary"),
            vmem_limit_bytes=_pick_vmem_limit(),
        ),
    )(jnp.asarray(b_start), jnp.asarray(m_start),
      bid_row, mid_row, bid_col, mid_col, xn,
      wn_p, bn_p, wb_p, bb_p, wm_p, bm_p,
      jnp.asarray(inv_b), jnp.asarray(inv_m))

    # strip padding / dummy tile, restore batch axis (batch == 1)
    note_out = note_h_pad[:n_notes, :h][None]
    beat_spanned = beat_span_pad[:n_notes, :hb][None]
    measure_spanned = meas_span_pad[:n_notes, :hm][None]
    return note_out, beat_spanned, measure_spanned


def make_params(key, in_feat, note_hidden, beat_hidden, meas_hidden):
    k = jax.random.split(key, 6)
    wn = jax.random.normal(k[0], (in_feat, note_hidden), jnp.float32) * 0.1
    bn = jax.random.normal(k[3], (1, note_hidden), jnp.float32) * 0.05
    wb = jax.random.normal(k[1], (note_hidden, beat_hidden), jnp.float32) * 0.1
    bb = jax.random.normal(k[4], (1, beat_hidden), jnp.float32) * 0.05
    wm = jax.random.normal(k[2], (note_hidden, meas_hidden), jnp.float32) * 0.1
    bm = jax.random.normal(k[5], (1, meas_hidden), jnp.float32) * 0.05
    return wn, bn, wb, bb, wm, bm


if __name__ == "__main__":
    # small synthetic shapes consistent with the module's forward (batch = 1)
    N_NOTES, IN_FEAT = 384, 16
    NOTE_H, BEAT_H, MEAS_H = 32, 16, 16

    key = jax.random.PRNGKey(0)
    kx, kp = jax.random.split(key)

    x = jax.random.normal(kx, (1, N_NOTES, IN_FEAT), jnp.float32)
    beat_numbers = np.arange(N_NOTES) // 4        # 4 notes per beat
    measure_numbers = np.arange(N_NOTES) // 8     # 8 notes per measure

    params = make_params(kp, IN_FEAT, NOTE_H, BEAT_H, MEAS_H)

    # tile_notes=128 here to exercise multi-tile accumulation at small N
    note_out, beat_spanned, measure_spanned = transformer_note_forward(
        x, beat_numbers, measure_numbers, params, tile_notes=128)
    jax.block_until_ready((note_out, beat_spanned, measure_spanned))

    # ---- pure-JAX reference (mirrors the bf16-operand / f32-accumulate path) ----
    wn, bn, wb, bb, wm, bm = params
    bf = jnp.bfloat16
    nh_ref = jnp.maximum(
        jnp.dot(x[0].astype(bf), wn.astype(bf), preferred_element_type=jnp.float32) + bn,
        0.0)
    nh_bf = nh_ref.astype(bf)

    def ref_pool_span(ids, w, b):
        ng = int(np.max(ids)) + 1
        oh = jax.nn.one_hot(jnp.asarray(ids), ng, dtype=jnp.float32)      # (N, NG)
        cnt = jnp.maximum(oh.sum(0), 1.0)[:, None]
        pooled = jnp.dot(oh.T.astype(bf), nh_bf,
                         preferred_element_type=jnp.float32) / cnt
        gh = jnp.maximum(
            jnp.dot(pooled.astype(bf), w.astype(bf),
                    preferred_element_type=jnp.float32) + b, 0.0)
        return jnp.dot(oh.astype(bf), gh.astype(bf),
                       preferred_element_type=jnp.float32)

    ref_beat_span = ref_pool_span(beat_numbers, wb, bb)
    ref_meas_span = ref_pool_span(measure_numbers, wm, bm)

    np.testing.assert_allclose(np.asarray(note_out[0].astype(jnp.float32)),
                               np.asarray(nh_ref), rtol=2e-2, atol=2e-2)
    np.testing.assert_allclose(np.asarray(beat_spanned[0].astype(jnp.float32)),
                               np.asarray(ref_beat_span), rtol=2e-2, atol=2e-2)
    np.testing.assert_allclose(np.asarray(measure_spanned[0].astype(jnp.float32)),
                               np.asarray(ref_meas_span), rtol=2e-2, atol=2e-2)

    print("KERNEL_OK")
</pallas_src>

<mosaic_0001>
module attributes {stable_mosaic.version = 11 : i64} {
  func.func @_fused_kernel(%arg0: i32, %arg1: i32, %arg2: memref<3xi32, #tpu.memory_space<smem>>, %arg3: memref<3xi32, #tpu.memory_space<smem>>, %arg4: memref<1x128xi32, #tpu.memory_space<vmem>>, %arg5: memref<1x128xi32, #tpu.memory_space<vmem>>, %arg6: memref<128x1xi32, #tpu.memory_space<vmem>>, %arg7: memref<128x1xi32, #tpu.memory_space<vmem>>, %arg8: memref<128x16xbf16, #tpu.memory_space<vmem>>, %arg9: memref<16x128xbf16, #tpu.memory_space<vmem>>, %arg10: memref<1x128xf32, #tpu.memory_space<vmem>>, %arg11: memref<128x128xbf16, #tpu.memory_space<vmem>>, %arg12: memref<1x128xf32, #tpu.memory_space<vmem>>, %arg13: memref<128x128xbf16, #tpu.memory_space<vmem>>, %arg14: memref<1x128xf32, #tpu.memory_space<vmem>>, %arg15: memref<96x1xf32, #tpu.memory_space<vmem>>, %arg16: memref<48x1xf32, #tpu.memory_space<vmem>>, %arg17: memref<128x128xbf16, #tpu.memory_space<vmem>>, %arg18: memref<128x128xbf16, #tpu.memory_space<vmem>>, %arg19: memref<128x128xbf16, #tpu.memory_space<vmem>>, %arg20: memref<96x128xf32, #tpu.memory_space<vmem>>, %arg21: memref<48x128xf32, #tpu.memory_space<vmem>>, %arg22: memref<96x128xf32, #tpu.memory_space<vmem>>, %arg23: memref<48x128xf32, #tpu.memory_space<vmem>>) attributes {dimension_semantics = [#tpu.dimension_semantics<arbitrary>, #tpu.dimension_semantics<arbitrary>], iteration_bounds = array<i64: 2, 3>, scalar_prefetch = 2 : i64, scratch_operands = 4 : i64, tpu.core_type = #tpu.core_type<tc>, window_params = [{transform_indices = @transform_0, window_bounds = array<i64: 1, 128>}, {transform_indices = @transform_1, window_bounds = array<i64: 1, 128>}, {transform_indices = @transform_2, window_bounds = array<i64: 128, 1>}, {transform_indices = @transform_3, window_bounds = array<i64: 128, 1>}, {transform_indices = @transform_4, window_bounds = array<i64: 128, 16>}, {pipeline_mode = #tpu.pipeline_mode<synchronous>, transform_indices = @transform_5, window_bounds = array<i64: 16, 128>}, {pipeline_mode = #tpu.pipeline_mode<synchronous>, transform_indices = @transform_6, window_bounds = array<i64: 1, 128>}, {pipeline_mode = #tpu.pipeline_mode<synchronous>, transform_indices = @transform_7, window_bounds = array<i64: 128, 128>}, {pipeline_mode = #tpu.pipeline_mode<synchronous>, transform_indices = @transform_8, window_bounds = array<i64: 1, 128>}, {pipeline_mode = #tpu.pipeline_mode<synchronous>, transform_indices = @transform_9, window_bounds = array<i64: 128, 128>}, {pipeline_mode = #tpu.pipeline_mode<synchronous>, transform_indices = @transform_10, window_bounds = array<i64: 1, 128>}, {pipeline_mode = #tpu.pipeline_mode<synchronous>, transform_indices = @transform_11, window_bounds = array<i64: 96, 1>}, {pipeline_mode = #tpu.pipeline_mode<synchronous>, transform_indices = @transform_12, window_bounds = array<i64: 48, 1>}, {transform_indices = @transform_13, window_bounds = array<i64: 128, 128>}, {transform_indices = @transform_14, window_bounds = array<i64: 128, 128>}, {transform_indices = @transform_15, window_bounds = array<i64: 128, 128>}]} {
    %0 = arith.index_cast %arg1 : i32 to index
    %1 = memref.load %arg2[%0] : memref<3xi32, #tpu.memory_space<smem>>
    %2 = tpu.assume_multiple %1, 8 : i32
    %3 = arith.index_cast %arg1 : i32 to index
    %4 = memref.load %arg3[%3] : memref<3xi32, #tpu.memory_space<smem>>
    %5 = tpu.assume_multiple %4, 8 : i32
    %c0_i32 = arith.constant 0 : i32
    %6 = arith.cmpi eq, %arg0, %c0_i32 : i32
    %c0_i32_0 = arith.constant 0 : i32
    %7 = arith.cmpi eq, %arg1, %c0_i32_0 : i32
    %8 = arith.andi %6, %7 : i1
    %9 = arith.extui %8 : i1 to i32
    %c0_i32_1 = arith.constant 0 : i32
    %10 = arith.cmpi ne, %9, %c0_i32_1 : i32
    scf.if %10 {
      %cst = arith.constant 0.000000e+00 : f32
      %22 = vector.broadcast %cst : f32 to vector<96x128xf32>
      %c0 = arith.constant 0 : index
      %c0_7 = arith.constant 0 : index
      %23 = vector.load %arg20[%c0, %c0_7] : memref<96x128xf32, #tpu.memory_space<vmem>>, vector<96x128xf32>
      tpu.vector_store %arg20[%c0, %c0_7], %22 {strides = array<i32>} : memref<96x128xf32, #tpu.memory_space<vmem>>, vector<96x128xf32>,
      %cst_8 = arith.constant 0.000000e+00 : f32
      %24 = vector.broadcast %cst_8 : f32 to vector<48x128xf32>
      %c0_9 = arith.constant 0 : index
      %c0_10 = arith.constant 0 : index
      %25 = vector.load %arg21[%c0_9, %c0_10] : memref<48x128xf32, #tpu.memory_space<vmem>>, vector<48x128xf32>
      tpu.vector_store %arg21[%c0_9, %c0_10], %24 {strides = array<i32>} : memref<48x128xf32, #tpu.memory_space<vmem>>, vector<48x128xf32>,
    } else {
    }
    %c0_i32_2 = arith.constant 0 : i32
    %11 = arith.cmpi eq, %arg0, %c0_i32_2 : i32
    %12 = arith.extui %11 : i1 to i32
    %c0_i32_3 = arith.constant 0 : i32
    %13 = arith.cmpi ne, %12, %c0_i32_3 : i32
    scf.if %13 {
      %c0 = arith.constant 0 : index
      %c0_7 = arith.constant 0 : index
      %22 = vector.load %arg8[%c0, %c0_7] : memref<128x16xbf16, #tpu.memory_space<vmem>>, vector<128x16xbf16>
      %c0_8 = arith.constant 0 : index
      %c0_9 = arith.constant 0 : index
      %23 = vector.load %arg9[%c0_8, %c0_9] : memref<16x128xbf16, #tpu.memory_space<vmem>>, vector<16x128xbf16>
      %cst = arith.constant dense<0.000000e+00> : vector<128x128xf32>
      %24 = tpu.matmul %22, %23, %cst {dimension_numbers = #tpu.dot_dimension_numbers<[1], [0], [0], [1], [0, 0, 1, 1], [], []>} : vector<128x16xbf16>, vector<16x128xbf16>, vector<128x128xf32> -> vector<128x128xf32>
      %c0_10 = arith.constant 0 : index
      %c0_11 = arith.constant 0 : index
      %25 = vector.load %arg10[%c0_10, %c0_11] : memref<1x128xf32, #tpu.memory_space<vmem>>, vector<1x128xf32>
      %26 = vector.broadcast %25 : vector<1x128xf32> to vector<128x128xf32>
      %27 = arith.addf %24, %26 : vector<128x128xf32>
      %cst_12 = arith.constant 0.000000e+00 : f32
      %28 = vector.broadcast %cst_12 : f32 to vector<128x128xf32>
      %29 = arith.maximumf %27, %28 : vector<128x128xf32>
      %30 = arith.truncf %29 : vector<128x128xf32> to vector<128x128xbf16>
      %c0_13 = arith.constant 0 : index
      %c0_14 = arith.constant 0 : index
      %31 = vector.load %arg17[%c0_13, %c0_14] : memref<128x128xbf16, #tpu.memory_space<vmem>>, vector<128x128xbf16>
      tpu.vector_store %arg17[%c0_13, %c0_14], %30 {strides = array<i32>} : memref<128x128xbf16, #tpu.memory_space<vmem>>, vector<128x128xbf16>,
      %32 = tpu.iota {dimensions = array<i32: 0>} : vector<48x128xi32>
      %c32_i32 = arith.constant 32 : i32
      %33 = vector.broadcast %c32_i32 : i32 to vector<48x128xi32>
      %34 = arith.cmpi slt, %32, %33 : vector<48x128xi32>
      %c0_15 = arith.constant 0 : index
      %c0_16 = arith.constant 0 : index
      %35 = vector.load %arg4[%c0_15, %c0_16] : memref<1x128xi32, #tpu.memory_space<vmem>>, vector<1x128xi32>
      %c0_17 = arith.constant 0 : index
      %c0_18 = arith.constant 0 : index
      %36 = vector.load %arg5[%c0_17, %c0_18] : memref<1x128xi32, #tpu.memory_space<vmem>>, vector<1x128xi32>
      %37 = vector.shape_cast %35 : vector<1x128xi32> to vector<1x128xi32>
      %38 = vector.broadcast %37 : vector<1x128xi32> to vector<48x128xi32>
      %39 = vector.shape_cast %36 : vector<1x128xi32> to vector<1x128xi32>
      %40 = vector.broadcast %39 : vector<1x128xi32> to vector<48x128xi32>
      %41 = arith.select %34, %38, %40 : vector<48x128xi1>, vector<48x128xi32>
      %42 = vector.broadcast %2 : i32 to vector<48x128xi32>
      %43 = arith.addi %32, %42 : vector<48x128xi32>
      %c32_i32_19 = arith.constant 32 : i32
      %44 = vector.broadcast %c32_i32_19 : i32 to vector<48x128xi32>
      %45 = arith.subi %32, %44 : vector<48x128xi32>
      %46 = vector.broadcast %5 : i32 to vector<48x128xi32>
      %47 = arith.addi %45, %46 : vector<48x128xi32>
      %48 = arith.select %34, %43, %47 : vector<48x128xi1>, vector<48x128xi32>
      %49 = arith.cmpi eq, %48, %41 : vector<48x128xi32>
      %50 = arith.extui %49 : vector<48x128xi1> to vector<48x128xi32>
      %51 = arith.sitofp %50 : vector<48x128xi32> to vector<48x128xf32>
      %52 = arith.truncf %51 : vector<48x128xf32> to vector<48x128xbf16>
      %cst_20 = arith.constant dense<0.000000e+00> : vector<48x128xf32>
      %53 = tpu.matmul %52, %30, %cst_20 {dimension_numbers = #tpu.dot_dimension_numbers<[1], [0], [0], [1], [0, 0, 1, 1], [], []>} : vector<48x128xbf16>, vector<128x128xbf16>, vector<48x128xf32> -> vector<48x128xf32>
      %54 = arith.index_cast %2 : i32 to index
      %c0_21 = arith.constant 0 : index
      %55 = vector.load %arg20[%54, %c0_21] : memref<96x128xf32, #tpu.memory_space<vmem>>, vector<32x128xf32>
      %56 = vector.extract_strided_slice %53 {offsets = [0, 0], sizes = [32, 128], strides = [1, 1]} : vector<48x128xf32> to vector<32x128xf32>
      %57 = arith.addf %55, %56 : vector<32x128xf32>
      %58 = arith.index_cast %2 : i32 to index
      %c0_22 = arith.constant 0 : index
      %59 = vector.load %arg20[%58, %c0_22] : memref<96x128xf32, #tpu.memory_space<vmem>>, vector<32x128xf32>
      tpu.vector_store %arg20[%58, %c0_22], %57 {strides = array<i32>} : memref<96x128xf32, #tpu.memory_space<vmem>>, vector<32x128xf32>,
      %60 = arith.index_cast %5 : i32 to index
      %c0_23 = arith.constant 0 : index
      %61 = vector.load %arg21[%60, %c0_23] : memref<48x128xf32, #tpu.memory_space<vmem>>, vector<16x128xf32>
      %62 = vector.extract_strided_slice %53 {offsets = [32, 0], sizes = [16, 128], strides = [1, 1]} : vector<48x128xf32> to vector<16x128xf32>
      %63 = arith.addf %61, %62 : vector<16x128xf32>
      %64 = arith.index_cast %5 : i32 to index
      %c0_24 = arith.constant 0 : index
      %65 = vector.load %arg21[%64, %c0_24] : memref<48x128xf32, #tpu.memory_space<vmem>>, vector<16x128xf32>
      tpu.vector_store %arg21[%64, %c0_24], %63 {strides = array<i32>} : memref<48x128xf32, #tpu.memory_space<vmem>>, vector<16x128xf32>,
    } else {
    }
    %c0_i32_4 = arith.constant 0 : i32
    %14 = arith.cmpi eq, %arg0, %c0_i32_4 : i32
    %c2_i32 = arith.constant 2 : i32
    %15 = arith.cmpi eq, %arg1, %c2_i32 : i32
    %16 = arith.andi %14, %15 : i1
    %17 = arith.extui %16 : i1 to i32
    %c0_i32_5 = arith.constant 0 : i32
    %18 = arith.cmpi ne, %17, %c0_i32_5 : i32
    scf.if %18 {
      %c0 = arith.constant 0 : index
      %c0_7 = arith.constant 0 : index
      %22 = vector.load %arg20[%c0, %c0_7] : memref<96x128xf32, #tpu.memory_space<vmem>>, vector<96x128xf32>
      %c0_8 = arith.constant 0 : index
      %c0_9 = arith.constant 0 : index
      %23 = vector.load %arg15[%c0_8, %c0_9] : memref<96x1xf32, #tpu.memory_space<vmem>>, vector<96x1xf32>
      %24 = vector.broadcast %23 : vector<96x1xf32> to vector<96x128xf32>
      %25 = arith.mulf %22, %24 : vector<96x128xf32>
      %26 = arith.truncf %25 : vector<96x128xf32> to vector<96x128xbf16>
      %c0_10 = arith.constant 0 : index
      %c0_11 = arith.constant 0 : index
      %27 = vector.load %arg11[%c0_10, %c0_11] : memref<128x128xbf16, #tpu.memory_space<vmem>>, vector<128x128xbf16>
      %cst = arith.constant dense<0.000000e+00> : vector<96x128xf32>
      %28 = tpu.matmul %26, %27, %cst {dimension_numbers = #tpu.dot_dimension_numbers<[1], [0], [0], [1], [0, 0, 1, 1], [], []>} : vector<96x128xbf16>, vector<128x128xbf16>, vector<96x128xf32> -> vector<96x128xf32>
      %c0_12 = arith.constant 0 : index
      %c0_13 = arith.constant 0 : index
      %29 = vector.load %arg12[%c0_12, %c0_13] : memref<1x128xf32, #tpu.memory_space<vmem>>, vector<1x128xf32>
      %30 = vector.broadcast %29 : vector<1x128xf32> to vector<96x128xf32>
      %31 = arith.addf %28, %30 : vector<96x128xf32>
      %cst_14 = arith.constant 0.000000e+00 : f32
      %32 = vector.broadcast %cst_14 : f32 to vector<96x128xf32>
      %33 = arith.maximumf %31, %32 : vector<96x128xf32>
      %c0_15 = arith.constant 0 : index
      %c0_16 = arith.constant 0 : index
      %34 = vector.load %arg22[%c0_15, %c0_16] : memref<96x128xf32, #tpu.memory_space<vmem>>, vector<96x128xf32>
      tpu.vector_store %arg22[%c0_15, %c0_16], %33 {strides = array<i32>} : memref<96x128xf32, #tpu.memory_space<vmem>>, vector<96x128xf32>,
      %c0_17 = arith.constant 0 : index
      %c0_18 = arith.constant 0 : index
      %35 = vector.load %arg21[%c0_17, %c0_18] : memref<48x128xf32, #tpu.memory_space<vmem>>, vector<48x128xf32>
      %c0_19 = arith.constant 0 : index
      %c0_20 = arith.constant 0 : index
      %36 = vector.load %arg16[%c0_19, %c0_20] : memref<48x1xf32, #tpu.memory_space<vmem>>, vector<48x1xf32>
      %37 = vector.broadcast %36 : vector<48x1xf32> to vector<48x128xf32>
      %38 = arith.mulf %35, %37 : vector<48x128xf32>
      %39 = arith.truncf %38 : vector<48x128xf32> to vector<48x128xbf16>
      %c0_21 = arith.constant 0 : index
      %c0_22 = arith.constant 0 : index
      %40 = vector.load %arg13[%c0_21, %c0_22] : memref<128x128xbf16, #tpu.memory_space<vmem>>, vector<128x128xbf16>
      %cst_23 = arith.constant dense<0.000000e+00> : vector<48x128xf32>
      %41 = tpu.matmul %39, %40, %cst_23 {dimension_numbers = #tpu.dot_dimension_numbers<[1], [0], [0], [1], [0, 0, 1, 1], [], []>} : vector<48x128xbf16>, vector<128x128xbf16>, vector<48x128xf32> -> vector<48x128xf32>
      %c0_24 = arith.constant 0 : index
      %c0_25 = arith.constant 0 : index
      %42 = vector.load %arg14[%c0_24, %c0_25] : memref<1x128xf32, #tpu.memory_space<vmem>>, vector<1x128xf32>
      %43 = vector.broadcast %42 : vector<1x128xf32> to vector<48x128xf32>
      %44 = arith.addf %41, %43 : vector<48x128xf32>
      %cst_26 = arith.constant 0.000000e+00 : f32
      %45 = vector.broadcast %cst_26 : f32 to vector<48x128xf32>
      %46 = arith.maximumf %44, %45 : vector<48x128xf32>
      %c0_27 = arith.constant 0 : index
      %c0_28 = arith.constant 0 : index
      %47 = vector.load %arg23[%c0_27, %c0_28] : memref<48x128xf32, #tpu.memory_space<vmem>>, vector<48x128xf32>
      tpu.vector_store %arg23[%c0_27, %c0_28], %46 {strides = array<i32>} : memref<48x128xf32, #tpu.memory_space<vmem>>, vector<48x128xf32>,
    } else {
    }
    %c1_i32 = arith.constant 1 : i32
    %19 = arith.cmpi eq, %arg0, %c1_i32 : i32
    %20 = arith.extui %19 : i1 to i32
    %c0_i32_6 = arith.constant 0 : i32
    %21 = arith.cmpi ne, %20, %c0_i32_6 : i32
    scf.if %21 {
      %c0 = arith.constant 0 : index
      %c0_7 = arith.constant 0 : index
      %22 = vector.load %arg6[%c0, %c0_7] : memref<128x1xi32, #tpu.memory_space<vmem>>, vector<128x1xi32>
      %23 = tpu.iota {dimensions = array<i32: 1>} : vector<128x32xi32>
      %24 = vector.broadcast %2 : i32 to vector<128x32xi32>
      %25 = arith.addi %23, %24 : vector<128x32xi32>
      %26 = vector.broadcast %22 : vector<128x1xi32> to vector<128x32xi32>
      %27 = arith.cmpi eq, %25, %26 : vector<128x32xi32>
      %28 = arith.extui %27 : vector<128x32xi1> to vector<128x32xi32>
      %29 = arith.sitofp %28 : vector<128x32xi32> to vector<128x32xf32>
      %30 = arith.truncf %29 : vector<128x32xf32> to vector<128x32xbf16>
      %31 = arith.index_cast %2 : i32 to index
      %c0_8 = arith.constant 0 : index
      %32 = vector.load %arg22[%31, %c0_8] : memref<96x128xf32, #tpu.memory_space<vmem>>, vector<32x128xf32>
      %33 = arith.truncf %32 : vector<32x128xf32> to vector<32x128xbf16>
      %cst = arith.constant dense<0.000000e+00> : vector<128x128xf32>
      %34 = tpu.matmul %30, %33, %cst {dimension_numbers = #tpu.dot_dimension_numbers<[1], [0], [0], [1], [0, 0, 1, 1], [], []>} : vector<128x32xbf16>, vector<32x128xbf16>, vector<128x128xf32> -> vector<128x128xf32>
      %35 = arith.truncf %34 : vector<128x128xf32> to vector<128x128xbf16>
      %c0_9 = arith.constant 0 : index
      %c0_10 = arith.constant 0 : index
      %36 = vector.load %arg18[%c0_9, %c0_10] : memref<128x128xbf16, #tpu.memory_space<vmem>>, vector<128x128xbf16>
      tpu.vector_store %arg18[%c0_9, %c0_10], %35 {strides = array<i32>} : memref<128x128xbf16, #tpu.memory_space<vmem>>, vector<128x128xbf16>,
      %c0_11 = arith.constant 0 : index
      %c0_12 = arith.constant 0 : index
      %37 = vector.load %arg7[%c0_11, %c0_12] : memref<128x1xi32, #tpu.memory_space<vmem>>, vector<128x1xi32>
      %38 = tpu.iota {dimensions = array<i32: 1>} : vector<128x16xi32>
      %39 = vector.broadcast %5 : i32 to vector<128x16xi32>
      %40 = arith.addi %38, %39 : vector<128x16xi32>
      %41 = vector.broadcast %37 : vector<128x1xi32> to vector<128x16xi32>
      %42 = arith.cmpi eq, %40, %41 : vector<128x16xi32>
      %43 = arith.extui %42 : vector<128x16xi1> to vector<128x16xi32>
      %44 = arith.sitofp %43 : vector<128x16xi32> to vector<128x16xf32>
      %45 = arith.truncf %44 : vector<128x16xf32> to vector<128x16xbf16>
      %46 = arith.index_cast %5 : i32 to index
      %c0_13 = arith.constant 0 : index
      %47 = vector.load %arg23[%46, %c0_13] : memref<48x128xf32, #tpu.memory_space<vmem>>, vector<16x128xf32>
      %48 = arith.truncf %47 : vector<16x128xf32> to vector<16x128xbf16>
      %cst_14 = arith.constant dense<0.000000e+00> : vector<128x128xf32>
      %49 = tpu.matmul %45, %48, %cst_14 {dimension_numbers = #tpu.dot_dimension_numbers<[1], [0], [0], [1], [0, 0, 1, 1], [], []>} : vector<128x16xbf16>, vector<16x128xbf16>, vector<128x128xf32> -> vector<128x128xf32>
      %50 = arith.truncf %49 : vector<128x128xf32> to vector<128x128xbf16>
      %c0_15 = arith.constant 0 : index
      %c0_16 = arith.constant 0 : index
      %51 = vector.load %arg19[%c0_15, %c0_16] : memref<128x128xbf16, #tpu.memory_space<vmem>>, vector<128x128xbf16>
      tpu.vector_store %arg19[%c0_15, %c0_16], %50 {strides = array<i32>} : memref<128x128xbf16, #tpu.memory_space<vmem>>, vector<128x128xbf16>,
    } else {
    }
    return
  }
  func.func @transform_0(%arg0: i32, %arg1: i32, %arg2: memref<3xi32, #tpu.memory_space<smem>>, %arg3: memref<3xi32, #tpu.memory_space<smem>>) -> (i32, i32) {
    %c1_i32 = arith.constant 1 : i32
    %0 = arith.subi %c1_i32, %arg0 : i32
    %1 = arith.muli %arg1, %0 : i32
    %c0_i32 = arith.constant 0 : i32
    %c0_i32_0 = arith.constant 0 : i32
    return %c0_i32, %1 : i32, i32
  }
  func.func @transform_1(%arg0: i32, %arg1: i32, %arg2: memref<3xi32, #tpu.memory_space<smem>>, %arg3: memref<3xi32, #tpu.memory_space<smem>>) -> (i32, i32) {
    %c1_i32 = arith.constant 1 : i32
    %0 = arith.subi %c1_i32, %arg0 : i32
    %1 = arith.muli %arg1, %0 : i32
    %c0_i32 = arith.constant 0 : i32
    %c0_i32_0 = arith.constant 0 : i32
    return %c0_i32, %1 : i32, i32
  }
  func.func @transform_2(%arg0: i32, %arg1: i32, %arg2: memref<3xi32, #tpu.memory_space<smem>>, %arg3: memref<3xi32, #tpu.memory_space<smem>>) -> (i32, i32) {
    %0 = arith.muli %arg1, %arg0 : i32
    %c0_i32 = arith.constant 0 : i32
    %c0_i32_0 = arith.constant 0 : i32
    return %0, %c0_i32 : i32, i32
  }
  func.func @transform_3(%arg0: i32, %arg1: i32, %arg2: memref<3xi32, #tpu.memory_space<smem>>, %arg3: memref<3xi32, #tpu.memory_space<smem>>) -> (i32, i32) {
    %0 = arith.muli %arg1, %arg0 : i32
    %c0_i32 = arith.constant 0 : i32
    %c0_i32_0 = arith.constant 0 : i32
    return %0, %c0_i32 : i32, i32
  }
  func.func @transform_4(%arg0: i32, %arg1: i32, %arg2: memref<3xi32, #tpu.memory_space<smem>>, %arg3: memref<3xi32, #tpu.memory_space<smem>>) -> (i32, i32) {
    %c1_i32 = arith.constant 1 : i32
    %0 = arith.subi %c1_i32, %arg0 : i32
    %1 = arith.muli %arg1, %0 : i32
    %c0_i32 = arith.constant 0 : i32
    %c0_i32_0 = arith.constant 0 : i32
    return %1, %c0_i32 : i32, i32
  }
  func.func @transform_5(%arg0: i32, %arg1: i32, %arg2: memref<3xi32, #tpu.memory_space<smem>>, %arg3: memref<3xi32, #tpu.memory_space<smem>>) -> (i32, i32) {
    %c0_i32 = arith.constant 0 : i32
    %c0_i32_0 = arith.constant 0 : i32
    %c0_i32_1 = arith.constant 0 : i32
    return %c0_i32, %c0_i32_0 : i32, i32
  }
  func.func @transform_6(%arg0: i32, %arg1: i32, %arg2: memref<3xi32, #tpu.memory_space<smem>>, %arg3: memref<3xi32, #tpu.memory_space<smem>>) -> (i32, i32) {
    %c0_i32 = arith.constant 0 : i32
    %c0_i32_0 = arith.constant 0 : i32
    %c0_i32_1 = arith.constant 0 : i32
    return %c0_i32, %c0_i32_0 : i32, i32
  }
  func.func @transform_7(%arg0: i32, %arg1: i32, %arg2: memref<3xi32, #tpu.memory_space<smem>>, %arg3: memref<3xi32, #tpu.memory_space<smem>>) -> (i32, i32) {
    %c0_i32 = arith.constant 0 : i32
    %c0_i32_0 = arith.constant 0 : i32
    %c0_i32_1 = arith.constant 0 : i32
    return %c0_i32, %c0_i32_0 : i32, i32
  }
  func.func @transform_8(%arg0: i32, %arg1: i32, %arg2: memref<3xi32, #tpu.memory_space<smem>>, %arg3: memref<3xi32, #tpu.memory_space<smem>>) -> (i32, i32) {
    %c0_i32 = arith.constant 0 : i32
    %c0_i32_0 = arith.constant 0 : i32
    %c0_i32_1 = arith.constant 0 : i32
    return %c0_i32, %c0_i32_0 : i32, i32
  }
  func.func @transform_9(%arg0: i32, %arg1: i32, %arg2: memref<3xi32, #tpu.memory_space<smem>>, %arg3: memref<3xi32, #tpu.memory_space<smem>>) -> (i32, i32) {
    %c0_i32 = arith.constant 0 : i32
    %c0_i32_0 = arith.constant 0 : i32
    %c0_i32_1 = arith.constant 0 : i32
    return %c0_i32, %c0_i32_0 : i32, i32
  }
  func.func @transform_10(%arg0: i32, %arg1: i32, %arg2: memref<3xi32, #tpu.memory_space<smem>>, %arg3: memref<3xi32, #tpu.memory_space<smem>>) -> (i32, i32) {
    %c0_i32 = arith.constant 0 : i32
    %c0_i32_0 = arith.constant 0 : i32
    %c0_i32_1 = arith.constant 0 : i32
    return %c0_i32, %c0_i32_0 : i32, i32
  }
  func.func @transform_11(%arg0: i32, %arg1: i32, %arg2: memref<3xi32, #tpu.memory_space<smem>>, %arg3: memref<3xi32, #tpu.memory_space<smem>>) -> (i32, i32) {
    %c0_i32 = arith.constant 0 : i32
    %c0_i32_0 = arith.constant 0 : i32
    %c0_i32_1 = arith.constant 0 : i32
    return %c0_i32, %c0_i32_0 : i32, i32
  }
  func.func @transform_12(%arg0: i32, %arg1: i32, %arg2: memref<3xi32, #tpu.memory_space<smem>>, %arg3: memref<3xi32, #tpu.memory_space<smem>>) -> (i32, i32) {
    %c0_i32 = arith.constant 0 : i32
    %c0_i32_0 = arith.constant 0 : i32
    %c0_i32_1 = arith.constant 0 : i32
    return %c0_i32, %c0_i32_0 : i32, i32
  }
  func.func @transform_13(%arg0: i32, %arg1: i32, %arg2: memref<3xi32, #tpu.memory_space<smem>>, %arg3: memref<3xi32, #tpu.memory_space<smem>>) -> (i32, i32) {
    %c1_i32 = arith.constant 1 : i32
    %0 = arith.subi %c1_i32, %arg0 : i32
    %1 = arith.muli %arg1, %0 : i32
    %c3_i32 = arith.constant 3 : i32
    %2 = arith.muli %c3_i32, %arg0 : i32
    %3 = arith.addi %1, %2 : i32
    %c0_i32 = arith.constant 0 : i32
    %c0_i32_0 = arith.constant 0 : i32
    return %3, %c0_i32 : i32, i32
  }
  func.func @transform_14(%arg0: i32, %arg1: i32, %arg2: memref<3xi32, #tpu.memory_space<smem>>, %arg3: memref<3xi32, #tpu.memory_space<smem>>) -> (i32, i32) {
    %0 = arith.muli %arg1, %arg0 : i32
    %c1_i32 = arith.constant 1 : i32
    %1 = arith.subi %c1_i32, %arg0 : i32
    %c3_i32 = arith.constant 3 : i32
    %2 = arith.muli %c3_i32, %1 : i32
    %3 = arith.addi %0, %2 : i32
    %c0_i32 = arith.constant 0 : i32
    %c0_i32_0 = arith.constant 0 : i32
    return %3, %c0_i32 : i32, i32
  }
  func.func @transform_15(%arg0: i32, %arg1: i32, %arg2: memref<3xi32, #tpu.memory_space<smem>>, %arg3: memref<3xi32, #tpu.memory_space<smem>>) -> (i32, i32) {
    %0 = arith.muli %arg1, %arg0 : i32
    %c1_i32 = arith.constant 1 : i32
    %1 = arith.subi %c1_i32, %arg0 : i32
    %c3_i32 = arith.constant 3 : i32
    %2 = arith.muli %c3_i32, %1 : i32
    %3 = arith.addi %0, %2 : i32
    %c0_i32 = arith.constant 0 : i32
    %c0_i32_0 = arith.constant 0 : i32
    return %3, %c0_i32 : i32, i32
  }
}

</mosaic_0001>

<bundles_post_ra>
// kernel: tpu_custom_call.1
= control target key start
LH: loop header
LB: loop body
LE: loop exit
PB: predicated region body
PF: predicated region fallthrough
CT: control target
= control target key end

     0   :  { %s2943_s30 = smov [#allocation8]   ;;  %s3722_s0 = inlined_call_operand.vmem [shape: s32[3], index: 0, kind: input, shape index: {}]   ;;  %s3723_s2 = inlined_call_operand.vmem [shape: s32[1,384], index: 2, kind: input, shape index: {}]   ;;  %s3724_s3 = inlined_call_operand.vmem [shape: s32[1,384], index: 3, kind: input, shape index: {}]   ;;  %s3725_s4 = inlined_call_operand.vmem [shape: s32[384,1], index: 4, kind: input, shape index: {}]   ;;  %s3726_s5 = inlined_call_operand.vmem [shape: s32[384,1], index: 5, kind: input, shape index: {}]   ;;  %s3727_s6 = inlined_call_operand.vmem [shape: bf16[384,16], index: 6, kind: input, shape index: {}]   ;;  %s3728_s7 = inlined_call_operand.vmem [shape: bf16[16,128], index: 7, kind: input, shape index: {}]   ;;  %s3729_s8 = inlined_call_operand.vmem [shape: f32[1,128], index: 8, kind: input, shape index: {}]   ;;  %s3730_s9 = inlined_call_operand.vmem [shape: bf16[128,128], index: 9, kind: input, shape index: {}]   ;;  %s3731_s10 = inlined_call_operand.vmem [shape: f32[1,128], index: 10, kind: input, shape index: {}]   ;;  %s3732_s11 = inlined_call_operand.vmem [shape: bf16[128,128], index: 11, kind: input, shape index: {}]   ;;  %s3733_s12 = inlined_call_operand.vmem [shape: f32[1,128], index: 12, kind: input, shape index: {}]   ;;  %s3734_s13 = inlined_call_operand.vmem [shape: f32[96,1], index: 13, kind: input, shape index: {}]   ;;  %s3735_s14 = inlined_call_operand.vmem [shape: f32[48,1], index: 14, kind: input, shape index: {}]   ;;  %s3736_s15 = inlined_call_operand.hbm [shape: bf16[512,128], index: 15, kind: output, shape index: {0}]   ;;  %s3737_s16 = inlined_call_operand.hbm [shape: bf16[512,128], index: 16, kind: output, shape index: {1}]   ;;  %s3738_s17 = inlined_call_operand.hbm [shape: bf16[512,128], index: 17, kind: output, shape index: {2}]   ;;  %s3739_s1 = inlined_call_operand.vmem [shape: s32[3], index: 1, kind: input, shape index: {}]  }
   0x1   :  { %3763 = sst [smem:[#allocation30_spill]] %s3722_s0  ;;  %s29_s29 = sshll.u32 %s3739_s1, 4  ;;  %s30_s29 = int_to_ptr.vmem [resolvable:$true] %s29_s29 }
   0x2   :  { %3764 = sst [smem:[#allocation31_spill]] %s3723_s2  ;;  %s2942_s0 = smov [#allocation7]  }
   0x3   :  { %3765 = sst [smem:[#allocation32_spill]] %s3724_s3 }
   0x4   :  { %3766 = sst [smem:[#allocation33_spill]] %s3725_s4 }
   0x5   :  { %3767 = sst [smem:[#allocation34_spill]] %s3726_s5 }
   0x6   :  { %3768 = sst [smem:[#allocation35_spill]] %s3727_s6 }
   0x7   :  { %3769 = sst [smem:[#allocation36_spill]] %s3728_s7 }
   0x8   :  { %3770 = sst [smem:[#allocation37_spill]] %s3729_s8 }
   0x9   :  { %3771 = sst [smem:[#allocation38_spill]] %s3730_s9 }
   0xa   :  { %3772 = sst [smem:[#allocation39_spill]] %s3731_s10 }
   0xb   :  { %3773 = sst [smem:[#allocation40_spill]] %s3732_s11 }
   0xc   :  { %3774 = sst [smem:[#allocation41_spill]] %s3733_s12 }
   0xd   :  { %3775 = sst [smem:[#allocation42_spill]] %s3734_s13 }
   0xe   :  { %3776 = sst [smem:[#allocation43_spill]] %s3735_s14 }
   0xf   :  { %3777 = sst [smem:[#allocation44_spill]] %s3736_s15 }
  0x10   :  { %3778 = sst [smem:[#allocation45_spill]] %s3737_s16 }
  0x11   :  { %3779 = sst [smem:[#allocation46_spill]] %s3738_s17 }
  0x12   :  { %s3780_s26 = sld [smem:[#allocation30_spill]] }
  0x18   :  { %s24_s10 = sshll.u32 %s3780_s26, 4  ;;  %s25_s10 = int_to_ptr.vmem [resolvable:$true] %s24_s10 }
  0x19   :  { %27 = dma.vmem_to_smem %s25_s10, 16, %s2942_s0, [#allocation6] }
  0x1a   :  { %32 = dma.vmem_to_smem %s30_s29, 16, %s2943_s30, [#allocation6] }
  0x1b   :  { %2888 = dma.done.wait [#allocation6], 32 }
  0x1c   :  { %2889 = vsyncadd [#allocation6], 4294967264 }
  0x1d   :  { %35 = sfence }
  0x1e   :  { %36 = vsyncpa [#allocation10], 0 }
  0x1f   :  { %38 = vsyncpa [#allocation10 + $0x1], 0 }
  0x20   :  { %39 = vsyncpa [#allocation12], 0 }
  0x21   :  { %41 = vsyncpa [#allocation12 + $0x1], 0  ;;  %s3047_s18 = smov 0   ;;  %s3049_s19 = smov 0  }
  0x22   :  { %s3051_s2 = smov 0   ;;  %s3053_s1 = smov 0  }
  0x23   :  { %s3055_s20 = smov 0   ;;  %s3057_s10 = smov 0  }
  0x24   :  { %s3059_s21 = smov 0   ;;  %s3061_s22 = smov 0  }
  0x25   :  { %s3063_s23 = smov 0   ;;  %s3065_s24 = smov 0  }
  0x26   :  { %s3067_s25 = smov 0  }
  0x27 LB: > { %3781 = sst [smem:[#allocation17_spill]] %s2904_s19  ;;  %s3744_s26 = sadd.s32 4294967295, %s2940_s25   ;;  %s2940_s25 = sphi %s3067_s25, %s47_s25   ;;  %s2936_s24 = sphi %s3065_s24, %s3837_s24   ;;  %s2932_s23 = sphi %s3063_s23, %s3836_s23   ;;  %s2928_s22 = sphi %s3061_s22, %s3835_s22   ;;  %s2924_s21 = sphi %s3059_s21, %s3834_s21   ;;  %s2920_s10 = sphi %s3057_s10, %s3833_s10   ;;  %s2916_s20 = sphi %s3055_s20, %s3839_s20   ;;  %s2912_s1 = sphi %s3053_s1, %s3838_s1   ;;  %s2908_s2 = sphi %s3051_s2, %s3831_s2   ;;  %s2904_s19 = sphi %s3049_s19, %s3830_s19   ;;  %s2900_s18 = sphi %s3047_s18, %s3829_s18  }
  0x28   : > { %3782 = sst [smem:[#allocation18_spill]] %s2908_s2  ;;  %s56_s28 = sadd.s32 1, %s2932_s23 }
  0x29   : > { %3783 = sst [smem:[#allocation19_spill]] %s2912_s1  ;;  %s59_s29 = sadd.s32 1, %s2936_s24 }
  0x2a   : > { %3784 = sst [smem:[#allocation20_spill]] %s2920_s10  ;;  %p57_p0 = scmp.ge.s32.totalorder %s56_s28, 3 }
  0x2b   : > { %3785 = sst [smem:[#allocation21_spill]] %s2932_s23  ;;  %s377_s0 = ssub.s32 1, %s2936_s24 }
  0x2c   : > { %3786 = sst [smem:[#allocation22_spill]] %s2936_s24  ;;  %s378_s30 = smul.u32 %s2932_s23, %s377_s0 }
  0x2d   : > { %s388_s15 = sadd.s32 1, %s2920_s10  ;;  %s3841_s28 = smov (%p57_p0, %s56_s28), 0 }
  0x2e   : > { %3787 = sst [smem:[#allocation23_spill]] %s3841_s28  ;;  %s3843_s29 = smov (!%p57_p0, %s59_s29), %s2936_s24 }
  0x2f   : > { %s379_s17 = smul.u32 3, %s2936_s24  ;;  %p398_p1 = scmp.ne.s32.totalorder %s2920_s10, %s2916_s20 }
  0x30   : > { %p61_p2 = scmp.ge.s32.totalorder %s3843_s29, 2  ;;  %p3117_p3 = scmp.eq.s32.totalorder %s3744_s26, 5 }
  0x31   : > { %s380_s16 = sadd.s32 %s379_s17, %s378_s30  ;;  %p404_p4 = scmp.ne.s32.totalorder %s2916_s20, %s2912_s1 }
  0x32   : > { %s3845_s29 = smov (%p61_p2, %s3843_s29), 0  ;;  %p3127_p5 = por %p3117_p3, %p398_p1 }
  0x33   : > { %3789 = sst [smem:[#allocation24_spill]] %s3845_s29  ;;  %s3792_s11 = sadd.s32 4294967294, %s2940_s25  }
  0x34   : > { %s3790_s12 = scalar_select %p3127_p5, 1, 0 }
  0x35   : > { %p3133_p6 = scmp.eq.s32.totalorder %s3792_s11, 5  ;;  %s381_s17 = ssub.s32 1, %s3845_s29 }
  0x36   : > { %3791 = sst [smem:[#allocation25_spill]] %s3790_s12  ;;  %s383_s30 = smul.u32 3, %s3845_s29 }
  0x37   : > { %s382_s1 = smul.u32 %s381_s17, %s3841_s28  ;;  %p3142_p7 = por %p3133_p6, %p404_p4 }
  0x38   : > { %s411_s13 = smul.u32 %s2932_s23, %s2936_s24  ;;  %s422_s12 = sadd.s32 1, %s2908_s2 }
  0x39   : > { %s3794_s9 = scalar_select %p3142_p7, 1, 0 }
  0x3a   : > { %s384_s11 = sadd.s32 %s383_s30, %s382_s1  ;;  %s413_s14 = smul.u32 3, %s377_s0 }
  0x3b   : > { %3795 = sst [smem:[#allocation26_spill]] %s3794_s9  ;;  %s385_s8 = ssub.s32 %s380_s16, %s384_s11 }
  0x3c   : > { %s415_s7 = smul.u32 %s3845_s29, %s3841_s28  ;;  %p386_p8 = scmp.eq.s32.totalorder %s385_s8, 0 }
  0x3d   : > { %s414_s6 = sadd.s32 %s413_s14, %s411_s13  ;;  %s417_s5 = smul.u32 3, %s381_s17 }
  0x3e   : > { %p432_p9 = scmp.ne.s32.totalorder %s2908_s2, %s2904_s19  ;;  %p438_p11 = scmp.ne.s32.totalorder %s2904_s19, %s2900_s18 }
  0x3f   : > { %s3154_s4 = scalar_select %p386_p8, %s2920_s10, %s388_s15  }
  0x40   : > { %s418_s3 = sadd.s32 %s417_s5, %s415_s7  ;;  %p3158_p10 = por %p432_p9, %p3117_p3 }
  0x41   : > { %3796 = sst [smem:[#allocation27_spill]] %s3154_s4  ;;  %s419_s24 = ssub.s32 %s414_s6, %s418_s3 }
  0x42   : > { %p420_p12 = scmp.eq.s32.totalorder %s419_s24, 0  ;;  %p2218_p13 = scmp.ge.s32.totalorder %s2940_s25, 1 }
  0x43   : > { %p3167_p0 = por %p438_p11, %p3133_p6  ;;  %p570_p1 = scmp.lt.s32.totalorder %s2940_s25, 7 }
  0x44   : > { %s3173_s8 = scalar_select %p420_p12, %s2908_s2, %s422_s12  }
  0x45   : > { %s3798_s16 = scalar_select %p3167_p0, 1, 0 }
  0x46   : > { %3800 = sst [smem:[#allocation29_spill]] %s3173_s8  ;;  %p571_p2 = pnand %p2218_p13, %p570_p1 }
  0x47   : > { %3799 = sst [smem:[#allocation28_spill]] %s3798_s16  ;;  %s3753_s3 = sand.u32 (!%p571_p2), 1, %s2916_s20  }
  0x48   : > { %574 = sbr.rel (%p571_p2) target bundleno = 1231 (0x4cf), region = 72  ;;  %s642_s5 = sand.u32 (!%p571_p2), 1, %s2904_s19  }
  0x49   : > { %s2219_s6 = sshll.u32 (!%p571_p2), %s3753_s3, 6  ;;  %s2220_s7 = sshll.u32 (!%p571_p2), %s642_s5, 6 }
  0x4a   : > { %s3754_s12 = ssub.s32 (!%p571_p2), 1, %s2928_s22  ;;  %s3186_s14 = sld [smem:[#allocation7 + %s2924_s21]] (!%p571_p2) }
  0x4b   : > { %s3183_s13 = smul.u32 (!%p571_p2), %s2924_s21, %s3754_s12  ;;  %s3193_s18 = sld [smem:[#allocation8 + %s2924_s21]] (!%p571_p2) }
  0x4c   : > { %s3190_s15 = smul.u32 (!%p571_p2), %s2924_s21, %s2928_s22  ;;  %p710_p8 = scmp.eq.s32.totalorder (!%p571_p2), %s2928_s22, 0 }
  0x4d   : > { %p654_p3 = scmp.lt.s32.totalorder %s3183_s13, 2  ;;  %s2226_s1 = sshll.u32 %s3183_s13, 4 }
  0x4e   : > { %s2222_s24 = sshll.u32 %s3190_s15, 4  ;;  %p685_p4 = scmp.lt.s32.totalorder %s2226_s1, 47 }
  0x4f   : > { %s3199_s26 = scalar_select %p654_p3, %s3183_s13, 2 }
  0x50   : > { %p668_p6 = scmp.lt.s32.totalorder %s2222_s24, 47  ;;  %s3801_s17 = sld [smem:[#allocation31_spill]] }
  0x51   : > { %s3802_s3 = sld [smem:[#allocation32_spill]]  ;;  %s3849_s1 = smov (!%p685_p4, %s2226_s1), 47 }
  0x52   : > { %s3847_s24 = smov (!%p668_p6, %s2222_s24), 47  ;;  %p711_p9 = scmp.eq.s32.totalorder %s2924_s21, 0 }
  0x53   : > { %s2223_s29 = sshll.u32 %s3847_s24, 3  ;;  %s3803_s4 = sld [smem:[#allocation33_spill]] }
  0x54   : > { %s3804_s19 = sld [smem:[#allocation34_spill]]  ;;  %s2227_s27 = sshll.u32 %s3849_s1, 2 }
  0x55   : > { %p712_p11 = pnand %p711_p9, %p710_p8  ;;  %s3228_s24 = scalar_lea.vmem [#allocation9], %s2219_s6 }
  0x56   : > { %s656_s30 = scalar_lea.vmem %s3801_s17, %s3199_s26  ;;  %s3230_s5 = scalar_lea.vmem [#allocation11], %s2220_s7 }
  0x57   : > { %s663_s12 = scalar_lea.vmem %s3802_s3, %s3199_s26  ;;  %s3805_s3 = sld [smem:[#allocation35_spill]] }
  0x58   : > { %s3232_s23 = scalar_lea.vmem [#allocation13], %s2220_s7 }
  0x59   : > { %s3214_s10 = scalar_lea.vmem %s3803_s4, %s2223_s29  ;;  %715 = sbr.rel (%p712_p11) target bundleno = 113 (0x71), region = 76 }
  0x5a   : > { %s3219_s16 = scalar_lea.vmem %s3804_s19, %s2223_s29 }
  0x5d   : > { %s3226_s11 = scalar_lea.vmem %s3805_s3, %s2227_s27 }
  0x5e   : > { %v2944_v0 = vmov 0.0  }
  0x5f   : > { %716 = vst [vmem:[#allocation2] sm:$0xff] %v2944_v0 }
  0x60   : > { %717 = vst [vmem:[#allocation2 + $0x8] sm:$0xff] %v2944_v0 }
  0x61   : > { %718 = vst [vmem:[#allocation2 + $0x10] sm:$0xff] %v2944_v0 }
  0x62   : > { %719 = vst [vmem:[#allocation2 + $0x18] sm:$0xff] %v2944_v0 }
  0x63   : > { %720 = vst [vmem:[#allocation2 + $0x20] sm:$0xff] %v2944_v0 }
  0x64   : > { %721 = vst [vmem:[#allocation2 + $0x28] sm:$0xff] %v2944_v0 }
  0x65   : > { %722 = vst [vmem:[#allocation2 + $0x30] sm:$0xff] %v2944_v0 }
  0x66   : > { %723 = vst [vmem:[#allocation2 + $0x38] sm:$0xff] %v2944_v0 }
  0x67   : > { %724 = vst [vmem:[#allocation2 + $0x40] sm:$0xff] %v2944_v0 }
  0x68   : > { %725 = vst [vmem:[#allocation2 + $0x48] sm:$0xff] %v2944_v0 }
  0x69   : > { %726 = vst [vmem:[#allocation2 + $0x50] sm:$0xff] %v2944_v0 }
  0x6a   : > { %727 = vst [vmem:[#allocation2 + $0x58] sm:$0xff] %v2944_v0 }
  0x6b   : > { %728 = vst [vmem:[#allocation3] sm:$0xff] %v2944_v0 }
  0x6c   : > { %729 = vst [vmem:[#allocation3 + $0x8] sm:$0xff] %v2944_v0 }
  0x6d   : > { %730 = vst [vmem:[#allocation3 + $0x10] sm:$0xff] %v2944_v0 }
  0x6e   : > { %731 = vst [vmem:[#allocation3 + $0x18] sm:$0xff] %v2944_v0 }
  0x6f   : > { %732 = vst [vmem:[#allocation3 + $0x20] sm:$0xff] %v2944_v0 }
  0x70   : > { %733 = vst [vmem:[#allocation3 + $0x28] sm:$0xff] %v2944_v0 }
  0x71 PF: > { %p2228_p12 = scmp.ne.s32.totalorder %s2928_s22, 0 }
  0x72   : > { %s3806_s2 = sld [smem:[#allocation36_spill]] (!%p2228_p12)  ;;  %s1068_s17 = scalar_lea.vmem (!%p2228_p12), [#allocation2], %s3186_s14 }
  0x73   : > { %736 = sbr.rel (%p2228_p12) target bundleno = 512 (0x200), region = 80  ;;  %s3807_s8 = sld [smem:[#allocation37_spill]] (!%p2228_p12) }
  0x78   : > { %v2422_v1 = vld [vmem:[%s3806_s2] sm:$0xff]  ;;  %vm805_vm0 = vcmask 130048   ;;  %v2419_v4 = vld [vmem:[%s3226_s11 + $0x28] sm:$0xff]  ;;  %v2420_v6 = vld [vmem:[%s3226_s11 + $0x30] sm:$0xff] }
  0x79   : > { %v2418_v2 = vld [vmem:[%s3226_s11 + $0x20] sm:$0xff]  ;;  %2583 = vmatpush.bf16.msra.mxu2 %v2422_v1  ;;  %837 = vmatpush.bf16.msra.mxu0 %v2422_v1  ;;  %v2415_v5 = vld [vmem:[%s3226_s11 + $0x8] sm:$0xff]  ;;  %v2416_v7 = vld [vmem:[%s3226_s11 + $0x10] sm:$0xff] }
  0x7a   : > { %v2414_v3 = vld [vmem:[%s3226_s11] sm:$0xff]  ;;  %v2421_v8 = vld [vmem:[%s3226_s11 + $0x38] sm:$0xff] }
  0x7b   : > { %v2417_v9 = vld [vmem:[%s3226_s11 + $0x18] sm:$0xff]  ;;  %v3257_v10 = vld [vmem:[%s3807_s8] ss:$0 sm:$0xff] }
  0x7c   : > { %2269 = vmatmul.msk.bf16.vlgmr.msra.gmra.mxu2 %vm805_vm0, %v2418_v2  ;;  %2265 = vmatmul.msk.bf16.vlgmr.msra.gmra.mxu0 %vm805_vm0, %v2414_v3 }
  0x8c   : > { %2270 = vmatmul.msk.bf16.gmra.mxu2 %vm805_vm0, %v2419_v4  ;;  %2266 = vmatmul.msk.bf16.gmra.mxu0 %vm805_vm0, %v2415_v5 }
  0x9c   : > { %2271 = vmatmul.msk.bf16.gmra.mxu2 %vm805_vm0, %v2420_v6  ;;  %2267 = vmatmul.msk.bf16.gmra.mxu0 %vm805_vm0, %v2416_v7 }
  0xac   : > { %2272 = vmatmul.msk.bf16.gmra.mxu2 %vm805_vm0, %v2421_v8  ;;  %2268 = vmatmul.msk.bf16.gmra.mxu0 %vm805_vm0, %v2417_v9 }
  0xf9   : > { %v839_v11 = vpop.f32.mrf.mxu0 }
  0xfa   : > { %v840_v12 = vadd.f32 %v3257_v10, %v839_v11 }
  0xfc   : > { %v879_v13 = vmax.f32 %v840_v12, 0.0 }
  0xfe   : > { %v895_v16 = vpack.c.bf16 %v879_v13, %v879_v13 }
  0xff   : > { %v859_v14 = vpop.f32.mrf.mxu2 }
 0x100   : > { %v860_v19 = vadd.f32 %v3257_v10, %v859_v14  ;;  %v1012_v22 = vunpack.c.l.b16 %v895_v16 }
 0x101   : > { %v841_v15 = vpop.f32.mrf.mxu0 }
 0x102   : > { %v842_v17 = vadd.f32 %v3257_v10, %v841_v15  ;;  %v3264_v27 = vmax.f32 %v860_v19, 0.0 }
 0x104   : > { %v880_v18 = vmax.f32 %v842_v17, 0.0 }
 0x106   : > { %v896_v20 = vpack.c.bf16 %v880_v18, %v880_v18  ;;  %v2445_v21 = vpack.c.bf16 %v880_v18, %v879_v13 }
 0x107   : > { %v861_v23 = vpop.f32.mrf.mxu2 }
 0x108   : > { %v862_v24 = vadd.f32 %v3257_v10, %v861_v23  ;;  %2446 = vst [vmem:[%s3228_s24] sm:$0xff] %v2445_v21   ;;  %v1013_v25 = vunpack.c.l.b16 %v896_v20 }
 0x109   : > { %v844_v26 = vpop.f32.mrf.mxu0 }
 0x10a   : > { %v3266_v28 = vmax.f32 %v862_v24, 0.0  ;;  %v3268_v29 = vpack.c.b16 %v1013_v25, %v1012_v22  ;;  %v845_v31 = vadd.f32 %v3257_v10, %v844_v26  ;;  %v903_v22 = vpack.c.bf16 %v3264_v27, %v3264_v27 }
 0x10c   : > { %v2465_v30 = vpack.c.bf16 %v3266_v28, %v3264_v27  ;;  %v3274_v34 = vmax.f32 %v845_v31, 0.0  ;;  %v1020_v31 = vunpack.c.l.b16 %v903_v22 }
 0x10e   : > { %2565 = vst [vmem:[%s3228_s24 + $0x20] sm:$0xff] %v2465_v30  }
 0x10f   : > { %v864_v32 = vpop.f32.mrf.mxu2 }
 0x110   : > { %v865_v37 = vadd.f32 %v3257_v10, %v864_v32  ;;  %v927_v32 = vlaneseq }
 0x111   : > { %v846_v33 = vpop.f32.mrf.mxu0 }
 0x112   : > { %v847_v35 = vadd.f32 %v3257_v10, %v846_v33  ;;  %v889_v42 = vmax.f32 %v865_v37, 0.0 }
 0x114   : > { %v3277_v36 = vmax.f32 %v847_v35, 0.0  ;;  %v905_v18 = vpack.c.bf16 %v889_v42, %v889_v42 }
 0x116   : > { %v2450_v38 = vpack.c.bf16 %v3277_v36, %v3274_v34  ;;  %v1022_v23 = vunpack.c.l.b16 %v905_v18 }
 0x117   : > { %v866_v39 = vpop.f32.mrf.mxu2 }
 0x118   : > { %v867_v40 = vadd.f32 %v3257_v10, %v866_v39  ;;  %2562 = vst [vmem:[%s3228_s24 + $0x8] sm:$0xff] %v2450_v38   ;;  %v928_v38 = vshrl.u32 %v927_v32, 7  ;;  %v897_v39 = vpack.c.bf16 %v3274_v34, %v3274_v34  ;;  %v2726_v34 = vld [vmem:[%s656_s30] ss:$0 sm:$0xff] }
 0x119   : > { %v849_v41 = vpop.f32.mrf.mxu0 }
 0x11a   : > { %v890_v43 = vmax.f32 %v867_v40, 0.0  ;;  %v850_v45 = vadd.f32 %v3257_v10, %v849_v41  ;;  %v898_v40 = vpack.c.bf16 %v3277_v36, %v3277_v36 }
 0x11c   : > { %v2470_v44 = vpack.c.bf16 %v890_v43, %v889_v42  ;;  %v3286_v48 = vmax.f32 %v850_v45, 0.0  ;;  %v906_v15 = vpack.c.bf16 %v890_v43, %v890_v43  ;;  %v931_v45 = vadd.s32 24, %v928_v38 }
 0x11e   : > { %2566 = vst [vmem:[%s3228_s24 + $0x28] sm:$0xff] %v2470_v44   ;;  %v1023_v21 = vunpack.c.l.b16 %v906_v15  ;;  %v930_v44 = vadd.s32 16, %v928_v38 }
 0x11f   : > { %v869_v46 = vpop.f32.mrf.mxu2 }
 0x120   : > { %v870_v51 = vadd.f32 %v3257_v10, %v869_v46  ;;  %v1033_v30 = vpack.c.b16 %v1023_v21, %v1022_v23  ;;  %v950_v46 = vstv %s3186_s14 }
 0x121   : > { %v851_v47 = vpop.f32.mrf.mxu0  ;;  %v953_v36 = vadd.s32 %v950_v46, %v930_v44 }
 0x122   : > { %v852_v49 = vadd.f32 %v3257_v10, %v851_v47  ;;  %v891_v56 = vmax.f32 %v870_v51, 0.0  ;;  %v929_v47 = vadd.s32 8, %v928_v38  ;;  %v954_v51 = vadd.s32 %v950_v46, %v931_v45 }
 0x123   : > { %vm977_vm1 = vcmp.eq.s32.totalorder %v953_v36, %v2726_v34 }
 0x124   : > { %v3289_v50 = vmax.f32 %v852_v49, 0.0  ;;  %v907_v12 = vpack.c.bf16 %v891_v56, %v891_v56  ;;  %v1014_v49 = vunpack.c.l.b16 %v897_v39  ;;  %vm978_vm2 = vcmp.eq.s32.totalorder %v954_v51, %v2726_v34 }
 0x125   : > { %vm2286_vm5 = vmpackc.low %vm978_vm2, %vm977_vm1 }
 0x126   : > { %v2455_v52 = vpack.c.bf16 %v3289_v50, %v3286_v48  ;;  %v1024_v19 = vunpack.c.l.b16 %v907_v12  ;;  %v900_v35 = vpack.c.bf16 %v3289_v50, %v3289_v50  ;;  %v1015_v50 = vunpack.c.l.b16 %v898_v40 }
 0x127   : > { %v871_v53 = vpop.f32.mrf.mxu2 }
 0x128   : > { %v872_v54 = vadd.f32 %v3257_v10, %v871_v53  ;;  %2563 = vst [vmem:[%s3228_s24 + $0x10] sm:$0xff] %v2455_v52   ;;  %v1017_v43 = vunpack.c.l.b16 %v900_v35  ;;  %v951_v52 = vadd.s32 %v950_v46, %v928_v38  ;;  %v952_v53 = vadd.s32 %v950_v46, %v929_v47 }
 0x129   : > { %v854_v55 = vpop.f32.mrf.mxu0 }
 0x12a   : > { %v892_v57 = vmax.f32 %v872_v54, 0.0  ;;  %v855_v59 = vadd.f32 %v3257_v10, %v854_v55  ;;  %v1029_v54 = vpack.c.b16 %v1015_v50, %v1014_v49  ;;  %vm975_vm3 = vcmp.eq.s32.totalorder %v951_v52, %v2726_v34 }
 0x12b   : > { %vm976_vm4 = vcmp.eq.s32.totalorder %v952_v53, %v2726_v34  ;;  %v933_v55 = vadd.s32 40, %v928_v38 }
 0x12c   : > { %v2475_v58 = vpack.c.bf16 %v892_v57, %v891_v56  ;;  %v885_v63 = vmax.f32 %v855_v59, 0.0  ;;  %v908_v8 = vpack.c.bf16 %v892_v57, %v892_v57  ;;  %vm2284_vm6 = vmpackc.low %vm976_vm4, %vm975_vm3  ;;  %v2945_v56 = vmov 1.0|1.0   ;;  %v2727_v59 = vld [vmem:[%s663_s12] ss:$0 sm:$0xff]  ;;  %s1081_s12 = scalar_lea.vmem [#allocation3], %s3193_s18 }
 0x12d   : > { %v2277_v57 = vadd.s32 4294967264, %v933_v55 }
 0x12e   : > { %2567 = vst [vmem:[%s3228_s24 + $0x30] sm:$0xff] %v2475_v58   ;;  %v1025_v17 = vunpack.c.l.b16 %v908_v8  ;;  %v901_v25 = vpack.c.bf16 %v885_v63, %v885_v63  ;;  %v962_v58 = vstv %s3193_s18 }
 0x12f   : > { %v874_v60 = vpop.f32.mrf.mxu2 }
 0x130   : > { %v875_v62 = vadd.f32 %v3257_v10, %v874_v60  ;;  %v1034_v20 = vpack.c.b16 %v1025_v17, %v1024_v19  ;;  %v1018_v27 = vunpack.c.l.b16 %v901_v25  ;;  %v967_v60 = vadd.s32 %v962_v58, %v928_v38 }
 0x131   : > { %v856_v61 = vpop.f32.mrf.mxu0 }
 0x132   : > { %v857_v0 = vadd.f32 %v3257_v10, %v856_v61  ;;  %v893_v2 = vmax.f32 %v875_v62, 0.0  ;;  %v968_v61 = vadd.s32 %v2277_v57, %v962_v58  ;;  %vm979_vm7 = vcmp.eq.s32.totalorder %v967_v60, %v2727_v59 }
 0x134   : > { %v886_v1 = vmax.f32 %v857_v0, 0.0  ;;  %v909_v6 = vpack.c.bf16 %v893_v2, %v893_v2  ;;  %vm980_vm8 = vcmp.eq.s32.totalorder %v968_v61, %v2727_v59  ;;  %v1071_v0 = vld [vmem:[%s1068_s17 + $0x10] sm:$0xff] }
 0x135   : > { %vm2288_vm9 = vmpackc.low %vm980_vm8, %vm979_vm7 }
 0x136   : > { %v2460_v3 = vpack.c.bf16 %v886_v1, %v885_v63  ;;  %v1026_v13 = vunpack.c.l.b16 %v909_v6  ;;  %v902_v26 = vpack.c.bf16 %v886_v1, %v886_v1  ;;  %v1072_v6 = vld [vmem:[%s1068_s17 + $0x18] sm:$0xff] }
 0x137   : > { %v876_v4 = vpop.f32.mrf.mxu2 }
 0x138   : > { %v877_v5 = vadd.f32 %v3257_v10, %v876_v4  ;;  %2564 = vst [vmem:[%s3228_s24 + $0x18] sm:$0xff] %v2460_v3   ;;  %v904_v10 = vpack.c.bf16 %v3266_v28, %v3266_v28  ;;  %v899_v28 = vpack.c.bf16 %v3286_v48, %v3286_v48  ;;  %v1019_v37 = vunpack.c.l.b16 %v902_v26 }
 0x13a   : > { %v894_v7 = vmax.f32 %v877_v5, 0.0  ;;  %v1021_v24 = vunpack.c.l.b16 %v904_v10  ;;  %v1031_v41 = vpack.c.b16 %v1019_v37, %v1018_v27  ;;  %v1016_v42 = vunpack.c.l.b16 %v899_v28 }
 0x13c   : > { %v910_v9 = vpack.c.bf16 %v894_v7, %v894_v7  ;;  %v2480_v11 = vpack.c.bf16 %v894_v7, %v893_v2  ;;  %v1032_v33 = vpack.c.b16 %v1021_v24, %v1020_v31  ;;  %v1030_v48 = vpack.c.b16 %v1017_v43, %v1016_v42  ;;  %v1070_v2 = vld [vmem:[%s1068_s17 + $0x8] sm:$0xff] }
 0x13e   : > { %2568 = vst [vmem:[%s3228_s24 + $0x38] sm:$0xff] %v2480_v11   ;;  %v1027_v14 = vunpack.c.l.b16 %v910_v9  ;;  %v1082_v9 = vld [vmem:[%s1081_s12] sm:$0xff] }
 0x140   : > { %v1035_v16 = vpack.c.b16 %v1027_v14, %v1026_v13  ;;  %v1083_v13 = vld [vmem:[%s1081_s12 + $0x8] sm:$0xff] }
 0x142   : > { %1044 = vmatpush.bf16.msra.mxu1 %v1035_v16  ;;  %2584 = vmatpush.bf16.msra.mxu3 %v1035_v16 }
 0x146   : > { %1045 = vmatpush.bf16.msra.mxu1 %v1034_v20  ;;  %2585 = vmatpush.bf16.msra.mxu3 %v1034_v20 }
 0x14a   : > { %1046 = vmatpush.bf16.msra.mxu1 %v1033_v30  ;;  %2586 = vmatpush.bf16.msra.mxu3 %v1033_v30 }
 0x14e   : > { %1047 = vmatpush.bf16.msra.mxu1 %v1032_v33  ;;  %2587 = vmatpush.bf16.msra.mxu3 %v1032_v33 }
 0x152   : > { %1048 = vmatpush.bf16.msra.mxu1 %v1031_v41  ;;  %2588 = vmatpush.bf16.msra.mxu3 %v1031_v41 }
 0x156   : > { %1049 = vmatpush.bf16.msra.mxu1 %v1030_v48  ;;  %2589 = vmatpush.bf16.msra.mxu3 %v1030_v48 }
 0x15a   : > { %1050 = vmatpush.bf16.msra.mxu1 %v1029_v54  ;;  %2590 = vmatpush.bf16.msra.mxu3 %v1029_v54 }
 0x15e   : > { %1051 = vmatpush.bf16.msra.mxu1 %v3268_v29  ;;  %2591 = vmatpush.bf16.msra.mxu3 %v3268_v29  ;;  %v1069_v29 = vld [vmem:[%s1068_s17] sm:$0xff] }
 0x161   : > { %2287 = vmatmul.msk.bf16.vlgmr.msra.gmra.mxu3 %vm2286_vm5, %v2945_v56  ;;  %2285 = vmatmul.msk.bf16.vlgmr.msra.gmra.mxu1 %vm2284_vm6, %v2945_v56 }
 0x171   : > { %2289 = vmatmul.msk.bf16.gmra.mxu3 %vm2288_vm9, %v2945_v56 }
 0x1de   : > { %v1053_v62 = vpop.f32.mrf.mxu1 }
 0x1df   : > { %v1073_v63 = vadd.f32 %v1069_v29, %v1053_v62 }
 0x1e1   : > { %1077 = vst [vmem:[%s1068_s17] sm:$0xff] %v1073_v63 }
 0x1e4   : > { %v1058_v1 = vpop.f32.mrf.mxu3 }
 0x1e5   : > { %v1075_v3 = vadd.f32 %v1071_v0, %v1058_v1 }
 0x1e6   : > { %v1055_v4 = vpop.f32.mrf.mxu1 }
 0x1e7   : > { %1079 = vst [vmem:[%s1068_s17 + $0x10] sm:$0xff] %v1075_v3  ;;  %v1074_v5 = vadd.f32 %v1070_v2, %v1055_v4 }
 0x1e9   : > { %1078 = vst [vmem:[%s1068_s17 + $0x8] sm:$0xff] %v1074_v5 }
 0x1ec   : > { %v1060_v7 = vpop.f32.mrf.mxu3 }
 0x1ed   : > { %v1076_v8 = vadd.f32 %v1072_v6, %v1060_v7 }
 0x1ef   : > { %1080 = vst [vmem:[%s1068_s17 + $0x18] sm:$0xff] %v1076_v8 }
 0x1f4   : > { %v1063_v11 = vpop.f32.mrf.mxu3 }
 0x1f5   : > { %v1084_v12 = vadd.f32 %v1082_v9, %v1063_v11 }
 0x1f7   : > { %1086 = vst [vmem:[%s1081_s12] sm:$0xff] %v1084_v12 }
 0x1fc   : > { %v1065_v14 = vpop.f32.mrf.mxu3 }
 0x1fd   : > { %v1085_v15 = vadd.f32 %v1083_v13, %v1065_v14 }
 0x1ff   : > { %1087 = vst [vmem:[%s1081_s12 + $0x8] sm:$0xff] %v1085_v15 }
 0x200 PF: > { %p1088_p13 = scmp.eq.s32.totalorder %s2924_s21, 2 }
 0x202   : > { %p1089_p1 = pnand %p1088_p13, %p710_p8 }
 0x203   : > { %s3810_s11 = sld [smem:[#allocation43_spill]] (!%p1089_p1) }
 0x204   : > { %1092 = sbr.rel (%p1089_p1) target bundleno = 828 (0x33c), region = 84  ;;  %s3811_s2 = sld [smem:[#allocation42_spill]] (!%p1089_p1) }
 0x205   : > { %s3813_s21 = sld [smem:[#allocation38_spill]] (!%p1089_p1) }
 0x206   : > { %s3815_s30 = sld [smem:[#allocation40_spill]] (!%p1089_p1) }
 0x207   : > { %s3816_s17 = sld [smem:[#allocation41_spill]] (!%p1089_p1) }
 0x208   : > { %s3817_s3 = sld [smem:[#allocation39_spill]] (!%p1089_p1) }
 0x209   : > { %v1332_v16 = vld [vmem:[%s3810_s11] sm:$0xff]  ;;  %v2946_v19 = vmov 0   ;;  %v1333_v10 = vld [vmem:[%s3810_s11 + $0x8] sm:$0xff]  ;;  %v1334_v23 = vld [vmem:[%s3810_s11 + $0x10] sm:$0xff] }
 0x20a   : > { %s3812_s28 = smov %s3811_s2  ;;  %v1113_v17 = vld [vmem:[%s3811_s2 + $0x40] sm:$0xff]  ;;  %2730 = vset.pattern.permute.xlu2 %v2946_v19  ;;  %2729 = vset.pattern.permute.xlu1 %v2946_v19  ;;  %v1335_v30 = vld [vmem:[%s3810_s11 + $0x18] sm:$0xff]  ;;  %v1337_v35 = vld [vmem:[%s3810_s11 + $0x28] sm:$0xff] }
 0x20b   : > { %v1111_v18 = vld [vmem:[%s3812_s28 + $0x30] sm:$0xff]  ;;  %2728 = vset.pattern.permute.xlu0 %v2946_v19  ;;  %1340 = vperm.xlu1 %2729, %v1332_v16   ;;  %v1114_v20 = vld [vmem:[%s3812_s28 + $0x48] sm:$0xff]  ;;  %v1112_v21 = vld [vmem:[%s3812_s28 + $0x38] sm:$0xff]  ;;  %s3814_s6 = smov %s3813_s21 }
 0x20c   : > { %1159 = vperm.xlu2 %2730, %v1113_v17   ;;  %1149 = vperm.xlu0 %2728, %v1111_v18   ;;  %v1106_v22 = vld [vmem:[%s3812_s28 + $0x8] sm:$0xff]  ;;  %v1105_v24 = vld [vmem:[%s3812_s28] sm:$0xff]  ;;  %v1116_v31 = vld [vmem:[%s3812_s28 + $0x58] sm:$0xff] }
 0x20d   : > { %v1109_v25 = vld [vmem:[%s3812_s28 + $0x20] sm:$0xff]  ;;  %v1110_v26 = vld [vmem:[%s3812_s28 + $0x28] sm:$0xff]  ;;  %v1107_v32 = vld [vmem:[%s3812_s28 + $0x10] sm:$0xff] }
 0x20e   : > { %v1115_v33 = vld [vmem:[%s3812_s28 + $0x50] sm:$0xff]  ;;  %v1336_v28 = vld [vmem:[%s3810_s11 + $0x20] sm:$0xff]  ;;  %v1108_v27 = vld [vmem:[%s3812_s28 + $0x18] sm:$0xff] }
 0x20f   : > { %v2430_v37 = vld [vmem:[%s3813_s21 + $0x38] sm:$0xff]  ;;  %v2429_v39 = vld [vmem:[%s3814_s6 + $0x30] sm:$0xff]  ;;  %v2428_v41 = vld [vmem:[%s3814_s6 + $0x28] sm:$0xff] }
 0x210   : > { %v2438_v38 = vld [vmem:[%s3815_s30 + $0x38] sm:$0xff]  ;;  %2593 = vmatpush.bf16.msra.mxu3 %v2430_v37  ;;  %1263 = vmatpush.bf16.msra.mxu0 %v2430_v37  ;;  %v2437_v40 = vld [vmem:[%s3815_s30 + $0x30] sm:$0xff]  ;;  %v2436_v42 = vld [vmem:[%s3815_s30 + $0x28] sm:$0xff] }
 0x211   : > { %1445 = vmatpush.bf16.msra.mxu1 %v2438_v38  ;;  %2592 = vmatpush.bf16.msra.mxu2 %v2430_v37  ;;  %v2427_v43 = vld [vmem:[%s3814_s6 + $0x20] sm:$0xff]  ;;  %v2426_v45 = vld [vmem:[%s3814_s6 + $0x18] sm:$0xff]  ;;  %v2425_v47 = vld [vmem:[%s3814_s6 + $0x10] sm:$0xff] }
 0x212   : > { %v2435_v44 = vld [vmem:[%s3815_s30 + $0x20] sm:$0xff]  ;;  %v2434_v46 = vld [vmem:[%s3815_s30 + $0x18] sm:$0xff]  ;;  %v2433_v48 = vld [vmem:[%s3815_s30 + $0x10] sm:$0xff] }
 0x213   : > { %1345 = vperm.xlu1 %2729, %v1333_v10   ;;  %v2424_v49 = vld [vmem:[%s3814_s6 + $0x8] sm:$0xff]  ;;  %v2423_v34 = vld [vmem:[%s3814_s6] sm:$0xff]  ;;  %v1099_v57 = vld [vmem:[#allocation2 + $0x30] sm:$0xff] }
 0x214   : > { %1164 = vperm.xlu2 %2730, %v1114_v20   ;;  %1154 = vperm.xlu0 %2728, %v1112_v21   ;;  %v2432_v50 = vld [vmem:[%s3815_s30 + $0x8] sm:$0xff]  ;;  %v2431_v36 = vld [vmem:[%s3815_s30] sm:$0xff]  ;;  %v1100_v58 = vld [vmem:[#allocation2 + $0x38] sm:$0xff] }
 0x215   : > { %2595 = vmatpush.bf16.msra.mxu3 %v2429_v39  ;;  %1446 = vmatpush.bf16.msra.mxu1 %v2437_v40  ;;  %v1326_v55 = vld [vmem:[#allocation3] sm:$0xff]  ;;  %v1327_v56 = vld [vmem:[#allocation3 + $0x8] sm:$0xff]  ;;  %v1328_v16 = vld [vmem:[#allocation3 + $0x10] sm:$0xff] }
 0x216   : > { %1264 = vmatpush.bf16.msra.mxu0 %v2429_v39  ;;  %2594 = vmatpush.bf16.msra.mxu2 %v2429_v39  ;;  %v1094_v3 = vld [vmem:[#allocation2 + $0x8] sm:$0xff]  ;;  %v1093_v4 = vld [vmem:[#allocation2] sm:$0xff]  ;;  %v1329_v17 = vld [vmem:[#allocation3 + $0x18] sm:$0xff] }
 0x217   : > { %v1101_v12 = vld [vmem:[#allocation2 + $0x40] sm:$0xff]  ;;  %v1102_v13 = vld [vmem:[#allocation2 + $0x48] sm:$0xff]  ;;  %v1095_v39 = vld [vmem:[#allocation2 + $0x10] sm:$0xff] }
 0x218   : > { %v1098_v14 = vld [vmem:[#allocation2 + $0x28] sm:$0xff]  ;;  %v1097_v15 = vld [vmem:[#allocation2 + $0x20] sm:$0xff]  ;;  %v1096_v40 = vld [vmem:[#allocation2 + $0x18] sm:$0xff] }
 0x219   : > { %2597 = vmatpush.bf16.msra.mxu3 %v2428_v41  ;;  %1447 = vmatpush.bf16.msra.mxu1 %v2436_v42  ;;  %v1330_v38 = vld [vmem:[#allocation3 + $0x20] sm:$0xff] }
 0x21a   : > { %1265 = vmatpush.bf16.msra.mxu0 %v2428_v41  ;;  %2596 = vmatpush.bf16.msra.mxu2 %v2428_v41 }
 0x21b   : > { %1124 = vperm.xlu1 %2729, %v1106_v22  }
 0x21c   : > { %1350 = vperm.xlu2 %2730, %v1334_v23   ;;  %1119 = vperm.xlu0 %2728, %v1105_v24  }
 0x21d   : > { %2599 = vmatpush.bf16.msra.mxu3 %v2427_v43  ;;  %1448 = vmatpush.bf16.msra.mxu1 %v2435_v44 }
 0x21e   : > { %1266 = vmatpush.bf16.msra.mxu0 %v2427_v43  ;;  %2598 = vmatpush.bf16.msra.mxu2 %v2427_v43 }
 0x221   : > { %2601 = vmatpush.bf16.msra.mxu3 %v2426_v45  ;;  %1449 = vmatpush.bf16.msra.mxu1 %v2434_v46 }
 0x222   : > { %1267 = vmatpush.bf16.msra.mxu0 %v2426_v45  ;;  %2600 = vmatpush.bf16.msra.mxu2 %v2426_v45 }
 0x223   : > { %1139 = vperm.xlu1 %2729, %v1109_v25  }
 0x224   : > { %1144 = vperm.xlu2 %2730, %v1110_v26   ;;  %1355 = vperm.xlu0 %2728, %v1335_v30  }
 0x225   : > { %2603 = vmatpush.bf16.msra.mxu3 %v2425_v47  ;;  %1450 = vmatpush.bf16.msra.mxu1 %v2433_v48 }
 0x226   : > { %1268 = vmatpush.bf16.msra.mxu0 %v2425_v47  ;;  %2602 = vmatpush.bf16.msra.mxu2 %v2425_v47 }
 0x229   : > { %2605 = vmatpush.bf16.msra.mxu3 %v2424_v49  ;;  %1451 = vmatpush.bf16.msra.mxu1 %v2432_v50 }
 0x22a   : > { %1269 = vmatpush.bf16.msra.mxu0 %v2424_v49  ;;  %2604 = vmatpush.bf16.msra.mxu2 %v2424_v49 }
 0x22b   : > { %1174 = vperm.xlu1 %2729, %v1116_v31  }
 0x22c   : > { %1129 = vperm.xlu2 %2730, %v1107_v32   ;;  %1169 = vperm.xlu0 %2728, %v1115_v33  }
 0x22d   : > { %2607 = vmatpush.bf16.msra.mxu3 %v2423_v34  ;;  %1452 = vmatpush.bf16.msra.mxu1 %v2431_v36  ;;  %v3439_v36 = vld [vmem:[%s3816_s17] ss:$0 sm:$0xff] }
 0x22e   : > { %1270 = vmatpush.bf16.msra.mxu0 %v2423_v34  ;;  %2606 = vmatpush.bf16.msra.mxu2 %v2423_v34 }
 0x233   : > { %1360 = vperm.xlu1 %2729, %v1336_v28   ;;  %v1104_v28 = vld [vmem:[#allocation2 + $0x58] sm:$0xff] }
 0x234   : > { %1365 = vperm.xlu2 %2730, %v1337_v35   ;;  %1134 = vperm.xlu0 %2728, %v1108_v27   ;;  %v1103_v35 = vld [vmem:[#allocation2 + $0x50] sm:$0xff]  ;;  %v1331_v27 = vld [vmem:[#allocation3 + $0x28] sm:$0xff] }
 0x266   : > { %v1160_v51 = vpop.permute.xlu2 %1159 }
 0x267   : > { %v1185_v18 = vmul.f32 %v1160_v51, %v1101_v12 }
 0x26e   : > { %v1165_v52 = vpop.permute.xlu2 %1164 }
 0x26f   : > { %v1186_v19 = vmul.f32 %v1165_v52, %v1102_v13 }
 0x271   : > { %v1193_v30 = vpack.c.bf16 %v1186_v19, %v1185_v18 }
 0x276   : > { %v1351_v59 = vpop.permute.xlu2 %1350 }
 0x277   : > { %v1370_v23 = vmul.f32 %v1351_v59, %v1328_v16 }
 0x27d   : > { %v1341_v53 = vpop.permute.xlu1 %1340 }
 0x27e   : > { %v1150_v54 = vpop.permute.xlu0 %1149  ;;  %v1368_v61 = vmul.f32 %v1341_v53, %v1326_v55  ;;  %v1145_v8 = vpop.permute.xlu2 %1144 }
 0x27f   : > { %v1183_v63 = vmul.f32 %v1150_v54, %v1099_v57  ;;  %v1182_v20 = vmul.f32 %v1145_v8, %v1098_v14  ;;  %v3445_v54 = vld [vmem:[%s3817_s3] ss:$0 sm:$0xff] }
 0x285   : > { %v1346_v60 = vpop.permute.xlu1 %1345 }
 0x286   : > { %v1369_v29 = vmul.f32 %v1346_v60, %v1327_v56  ;;  %v1155_v62 = vpop.permute.xlu0 %1154  ;;  %v1130_v26 = vpop.permute.xlu2 %1129 }
 0x287   : > { %v1184_v0 = vmul.f32 %v1155_v62, %v1100_v58  ;;  %v1179_v47 = vmul.f32 %v1130_v26, %v1095_v39 }
 0x288   : > { %v1374_v1 = vpack.c.bf16 %v1369_v29, %v1368_v61 }
 0x289   : > { %v1192_v2 = vpack.c.bf16 %v1184_v0, %v1183_v63 }
 0x28a   : > { %1453 = vmatmul.bf16.vlgmr.msra.gmra.mxu1 %v1374_v1 }
 0x28b   : > { %1286 = vmatmul.bf16.vlgmr.msra.gmra.mxu3 %v1192_v2 }
 0x28d   : > { %v1125_v5 = vpop.permute.xlu1 %1124 }
 0x28e   : > { %v1178_v6 = vmul.f32 %v1125_v5, %v1094_v3  ;;  %v1120_v7 = vpop.permute.xlu0 %1119  ;;  %v1366_v37 = vpop.permute.xlu2 %1365 }
 0x28f   : > { %v1177_v9 = vmul.f32 %v1120_v7, %v1093_v4  ;;  %v1373_v44 = vmul.f32 %v1366_v37, %v1331_v27 }
 0x291   : > { %v1189_v11 = vpack.c.bf16 %v1178_v6, %v1177_v9 }
 0x293   : > { %1271 = vmatmul.bf16.vlgmr.msra.gmra.mxu0 %v1189_v11 }
 0x295   : > { %v1140_v10 = vpop.permute.xlu1 %1139 }
 0x296   : > { %v1181_v21 = vmul.f32 %v1140_v10, %v1097_v15  ;;  %v1356_v22 = vpop.permute.xlu0 %1355 }
 0x297   : > { %v1371_v24 = vmul.f32 %v1356_v22, %v1329_v17 }
 0x298   : > { %v1191_v25 = vpack.c.bf16 %v1182_v20, %v1181_v21 }
 0x299   : > { %v1375_v31 = vpack.c.bf16 %v1371_v24, %v1370_v23 }
 0x29a   : > { %1281 = vmatmul.bf16.vlgmr.msra.gmra.mxu2 %v1191_v25 }
 0x29b   : > { %1291 = vmatmul.bf16.gmra.mxu3 %v1193_v30  ;;  %1458 = vmatmul.bf16.gmra.mxu1 %v1375_v31 }
 0x29d   : > { %v1175_v32 = vpop.permute.xlu1 %1174 }
 0x29e   : > { %v1170_v33 = vpop.permute.xlu0 %1169  ;;  %v1188_v41 = vmul.f32 %v1175_v32, %v1104_v28 }
 0x29f   : > { %v1187_v42 = vmul.f32 %v1170_v33, %v1103_v35 }
 0x2a1   : > { %v1194_v34 = vpack.c.bf16 %v1188_v41, %v1187_v42 }
 0x2a5   : > { %v1361_v43 = vpop.permute.xlu1 %1360 }
 0x2a6   : > { %v1372_v45 = vmul.f32 %v1361_v43, %v1330_v38  ;;  %v1135_v46 = vpop.permute.xlu0 %1134 }
 0x2a7   : > { %v1180_v48 = vmul.f32 %v1135_v46, %v1096_v40 }
 0x2a8   : > { %v1376_v49 = vpack.c.bf16 %v1373_v44, %v1372_v45 }
 0x2a9   : > { %v1190_v50 = vpack.c.bf16 %v1180_v48, %v1179_v47 }
 0x2ab   : > { %1276 = vmatmul.bf16.gmra.mxu0 %v1190_v50  ;;  %1296 = vmatmul.bf16.gmra.mxu3 %v1194_v34 }
 0x2ac   : > { %1463 = vmatmul.bf16.gmra.mxu1 %v1376_v49 }
 0x307   : > { %v1454_v51 = vpop.f32.mrf.mxu1 }
 0x308   : > { %v1455_v52 = vadd.f32 %v3439_v36, %v1454_v51 }
 0x30a   : > { %v1469_v53 = vmax.f32 %v1455_v52, 0.0 }
 0x30c   : > { %1475 = vst [vmem:[#allocation5] sm:$0xff] %v1469_v53 }
 0x30e   : > { %v1287_v55 = vpop.f32.mrf.mxu3 }
 0x30f   : > { %v1288_v56 = vadd.f32 %v3445_v54, %v1287_v55  ;;  %v1456_v57 = vpop.f32.mrf.mxu1 }
 0x310   : > { %v1272_v58 = vpop.f32.mrf.mxu0  ;;  %v1457_v59 = vadd.f32 %v3439_v36, %v1456_v57 }
 0x311   : > { %v1308_v60 = vmax.f32 %v1288_v56, 0.0  ;;  %v1273_v61 = vadd.f32 %v3445_v54, %v1272_v58 }
 0x312   : > { %v1470_v29 = vmax.f32 %v1457_v59, 0.0 }
 0x313   : > { %1320 = vst [vmem:[#allocation4 + $0x30] sm:$0xff] %v1308_v60  ;;  %v1302_v62 = vmax.f32 %v1273_v61, 0.0 }
 0x314   : > { %1476 = vst [vmem:[#allocation5 + $0x8] sm:$0xff] %v1470_v29 }
 0x315   : > { %1314 = vst [vmem:[#allocation4] sm:$0xff] %v1302_v62 }
 0x316   : > { %v1289_v63 = vpop.f32.mrf.mxu3 }
 0x317   : > { %v1290_v0 = vadd.f32 %v3445_v54, %v1289_v63 }
 0x318   : > { %v1274_v1 = vpop.f32.mrf.mxu0  ;;  %v1459_v2 = vpop.f32.mrf.mxu1 }
 0x319   : > { %v1309_v3 = vmax.f32 %v1290_v0, 0.0  ;;  %v1275_v4 = vadd.f32 %v3445_v54, %v1274_v1  ;;  %v1460_v5 = vadd.f32 %v3439_v36, %v1459_v2 }
 0x31b   : > { %1321 = vst [vmem:[#allocation4 + $0x38] sm:$0xff] %v1309_v3  ;;  %v1303_v6 = vmax.f32 %v1275_v4, 0.0  ;;  %v1471_v7 = vmax.f32 %v1460_v5, 0.0 }
 0x31d   : > { %1315 = vst [vmem:[#allocation4 + $0x8] sm:$0xff] %v1303_v6  ;;  %v1282_v8 = vpop.f32.mrf.mxu2 }
 0x31e   : > { %1477 = vst [vmem:[#allocation5 + $0x10] sm:$0xff] %v1471_v7  ;;  %v1283_v9 = vadd.f32 %v3445_v54, %v1282_v8  ;;  %v1292_v11 = vpop.f32.mrf.mxu3 }
 0x31f   : > { %v1293_v12 = vadd.f32 %v3445_v54, %v1292_v11 }
 0x320   : > { %v1306_v13 = vmax.f32 %v1283_v9, 0.0  ;;  %v1461_v14 = vpop.f32.mrf.mxu1 }
 0x321   : > { %v1310_v15 = vmax.f32 %v1293_v12, 0.0  ;;  %v1462_v16 = vadd.f32 %v3439_v36, %v1461_v14 }
 0x322   : > { %1318 = vst [vmem:[#allocation4 + $0x20] sm:$0xff] %v1306_v13 }
 0x323   : > { %1322 = vst [vmem:[#allocation4 + $0x40] sm:$0xff] %v1310_v15  ;;  %v1472_v17 = vmax.f32 %v1462_v16, 0.0 }
 0x325   : > { %1478 = vst [vmem:[#allocation5 + $0x18] sm:$0xff] %v1472_v17  ;;  %v1284_v18 = vpop.f32.mrf.mxu2 }
 0x326   : > { %v1285_v19 = vadd.f32 %v3445_v54, %v1284_v18  ;;  %v1294_v10 = vpop.f32.mrf.mxu3 }
 0x327   : > { %v1295_v20 = vadd.f32 %v3445_v54, %v1294_v10 }
 0x328   : > { %v1307_v21 = vmax.f32 %v1285_v19, 0.0  ;;  %v1277_v22 = vpop.f32.mrf.mxu0 }
 0x329   : > { %v1311_v23 = vmax.f32 %v1295_v20, 0.0  ;;  %v1278_v24 = vadd.f32 %v3445_v54, %v1277_v22  ;;  %v1464_v25 = vpop.f32.mrf.mxu1 }
 0x32a   : > { %1319 = vst [vmem:[#allocation4 + $0x28] sm:$0xff] %v1307_v21  ;;  %v1465_v26 = vadd.f32 %v3439_v36, %v1464_v25 }
 0x32b   : > { %1323 = vst [vmem:[#allocation4 + $0x48] sm:$0xff] %v1311_v23  ;;  %v1304_v30 = vmax.f32 %v1278_v24, 0.0 }
 0x32c   : > { %v1473_v31 = vmax.f32 %v1465_v26, 0.0 }
 0x32d   : > { %1316 = vst [vmem:[#allocation4 + $0x10] sm:$0xff] %v1304_v30 }
 0x32e   : > { %1479 = vst [vmem:[#allocation5 + $0x20] sm:$0xff] %v1473_v31  ;;  %v1297_v32 = vpop.f32.mrf.mxu3 }
 0x32f   : > { %v1298_v33 = vadd.f32 %v3445_v54, %v1297_v32 }
 0x330   : > { %v1279_v28 = vpop.f32.mrf.mxu0 }
 0x331   : > { %v1312_v35 = vmax.f32 %v1298_v33, 0.0  ;;  %v1280_v27 = vadd.f32 %v3445_v54, %v1279_v28  ;;  %v1466_v37 = vpop.f32.mrf.mxu1 }
 0x332   : > { %v1467_v38 = vadd.f32 %v3439_v36, %v1466_v37 }
 0x333   : > { %1324 = vst [vmem:[#allocation4 + $0x50] sm:$0xff] %v1312_v35  ;;  %v1305_v39 = vmax.f32 %v1280_v27, 0.0 }
 0x334   : > { %v1474_v40 = vmax.f32 %v1467_v38, 0.0 }
 0x335   : > { %1317 = vst [vmem:[#allocation4 + $0x18] sm:$0xff] %v1305_v39 }
 0x336   : > { %1480 = vst [vmem:[#allocation5 + $0x28] sm:$0xff] %v1474_v40  ;;  %v1299_v41 = vpop.f32.mrf.mxu3 }
 0x337   : > { %v1300_v42 = vadd.f32 %v3445_v54, %v1299_v41 }
 0x339   : > { %v1313_v43 = vmax.f32 %v1300_v42, 0.0 }
 0x33b   : > { %1325 = vst [vmem:[#allocation4 + $0x58] sm:$0xff] %v1313_v43 }
 0x33c PF: > { %p2354_p2 = scmp.ne.s32.totalorder %s2928_s22, 1 }
 0x33d   : > { %s1609_s4 = scalar_lea.vmem (!%p2354_p2), [#allocation4], %s3186_s14 }
 0x33e   : > { %1484 = sbr.rel (%p2354_p2) target bundleno = 1174 (0x496), region = 88 }
 0x343   : > { %v1722_v44 = vld [vmem:[%s3219_s16] sm:$0xff]  ;;  %v2947_v47 = vmov 0   ;;  %v1494_v48 = vld [vmem:[%s3214_s10 + $0x48] sm:$0xff]  ;;  %v1725_v34 = vld [vmem:[%s3219_s16 + $0x18] sm:$0xff]  ;;  %v1501_v17 = vlaneseq  ;;  %v1503_v19 = vstv %s3186_s14  ;;  %v2948_v24 = vmov 0.0  }
 0x344   : > { %v1493_v45 = vld [vmem:[%s3214_s10 + $0x40] sm:$0xff]  ;;  %2735 = vset.pattern.permute.xlu2 %v2947_v47  ;;  %2734 = vset.pattern.permute.xlu1 %v2947_v47  ;;  %v1723_v49 = vld [vmem:[%s3219_s16 + $0x8] sm:$0xff]  ;;  %v1724_v36 = vld [vmem:[%s3219_s16 + $0x10] sm:$0xff]  ;;  %vm1616_vm12 = vcmask 261120   ;;  %v1738_v28 = vstv %s3193_s18  ;;  %vm1848_vm1 = vcmask 130048  }
 0x345   : > { %v1485_v46 = vld [vmem:[%s3214_s10] sm:$0xff]  ;;  %2733 = vset.pattern.permute.xlu0 %v2947_v47  ;;  %1530 = vperm.xlu1 %2734, %v1493_v45   ;;  %v1486_v50 = vld [vmem:[%s3214_s10 + $0x8] sm:$0xff]  ;;  %v1495_v51 = vld [vmem:[%s3214_s10 + $0x50] sm:$0xff]  ;;  %v1502_v18 = vand.u32 127, %v1501_v17 }
 0x346   : > { %1741 = vperm.xlu0 %2733, %v1722_v44   ;;  %1506 = vperm.xlu2 %2735, %v1485_v46   ;;  %v1732_v52 = vld [vmem:[%s3219_s16 + $0x50] sm:$0xff]  ;;  %v1496_v53 = vld [vmem:[%s3214_s10 + $0x58] sm:$0xff]  ;;  %v1726_v57 = vld [vmem:[%s3219_s16 + $0x20] sm:$0xff] }
 0x347   : > { %v1733_v54 = vld [vmem:[%s3219_s16 + $0x58] sm:$0xff]  ;;  %v1487_v56 = vld [vmem:[%s3214_s10 + $0x10] sm:$0xff]  ;;  %v1497_v58 = vld [vmem:[%s3214_s10 + $0x60] sm:$0xff]  ;;  %v3500_v23 = vadd.s32 %v1503_v19, %v1502_v18  ;;  %v3508_v27 = vadd.s32 %v1738_v28, %v1502_v18 }
 0x348   : > { %v1488_v55 = vld [vmem:[%s3214_s10 + $0x18] sm:$0xff]  ;;  %v1727_v59 = vld [vmem:[%s3219_s16 + $0x28] sm:$0xff]  ;;  %v1734_v29 = vld [vmem:[%s3219_s16 + $0x60] sm:$0xff] }
 0x349   : > { %v1498_v60 = vld [vmem:[%s3214_s10 + $0x68] sm:$0xff]  ;;  %v1489_v62 = vld [vmem:[%s3214_s10 + $0x20] sm:$0xff]  ;;  %v1728_v63 = vld [vmem:[%s3219_s16 + $0x30] sm:$0xff] }
 0x34a   : > { %v1735_v61 = vld [vmem:[%s3219_s16 + $0x68] sm:$0xff]  ;;  %v1729_v1 = vld [vmem:[%s3219_s16 + $0x38] sm:$0xff]  ;;  %v1499_v3 = vld [vmem:[%s3214_s10 + $0x70] sm:$0xff] }
 0x34b   : > { %v1490_v0 = vld [vmem:[%s3214_s10 + $0x28] sm:$0xff]  ;;  %v1500_v2 = vld [vmem:[%s3214_s10 + $0x78] sm:$0xff]  ;;  %v1736_v4 = vld [vmem:[%s3219_s16 + $0x70] sm:$0xff] }
 0x34c   : > { %v1491_v5 = vld [vmem:[%s3214_s10 + $0x30] sm:$0xff]  ;;  %v1737_v6 = vld [vmem:[%s3219_s16 + $0x78] sm:$0xff]  ;;  %v1731_v8 = vld [vmem:[%s3219_s16 + $0x48] sm:$0xff] }
 0x34d   : > { %1533 = vperm.xlu1 %2734, %v1494_v48   ;;  %v1492_v7 = vld [vmem:[%s3214_s10 + $0x38] sm:$0xff]  ;;  %v1612_v9 = vld [vmem:[%s1609_s4 + $0x10] sm:$0xff]  ;;  %v1730_v12 = vld [vmem:[%s3219_s16 + $0x40] sm:$0xff]  ;;  %s1844_s10 = scalar_lea.vmem [#allocation5], %s3193_s18 }
 0x34e   : > { %1744 = vperm.xlu0 %2733, %v1723_v49   ;;  %1509 = vperm.xlu2 %2735, %v1486_v50   ;;  %v1613_v11 = vld [vmem:[%s1609_s4 + $0x18] sm:$0xff]  ;;  %v1610_v14 = vld [vmem:[%s1609_s4] sm:$0xff]  ;;  %v1611_v15 = vld [vmem:[%s1609_s4 + $0x8] sm:$0xff] }
 0x34f   : > { %v1615_v13 = vpack.c.bf16 %v1613_v11, %v1612_v9  ;;  %v1614_v16 = vpack.c.bf16 %v1611_v15, %v1610_v14  ;;  %v1845_v10 = vld [vmem:[%s1844_s10] sm:$0xff]  ;;  %v1846_v20 = vld [vmem:[%s1844_s10 + $0x8] sm:$0xff] }
 0x350   : > { %v1847_v22 = vpack.c.bf16 %v1846_v20, %v1845_v10 }
 0x351   : > { %1647 = vmatpush.bf16.msra.mxu0 %v1615_v13  ;;  %2608 = vmatpush.bf16.msra.mxu2 %v1615_v13 }
 0x352   : > { %1880 = vmatpush.bf16.msra.mxu1 %v1847_v22  ;;  %2610 = vmatpush.bf16.msra.mxu3 %v1847_v22 }
 0x355   : > { %1750 = vperm.xlu1 %2734, %v1725_v34   ;;  %1648 = vmatpush.bf16.msra.mxu0 %v1614_v16 }
 0x356   : > { %1747 = vperm.xlu0 %2733, %v1724_v36   ;;  %1536 = vperm.xlu2 %2735, %v1495_v51  }
 0x357   : > { %2609 = vmatpush.bf16.msra.mxu2 %v1614_v16 }
 0x35d   : > { %1771 = vperm.xlu1 %2734, %v1732_v52  }
 0x35e   : > { %1539 = vperm.xlu0 %2733, %v1496_v53   ;;  %1774 = vperm.xlu2 %2735, %v1733_v54  }
 0x365   : > { %1515 = vperm.xlu1 %2734, %v1488_v55  }
 0x366   : > { %1512 = vperm.xlu0 %2733, %v1487_v56   ;;  %1753 = vperm.xlu2 %2735, %v1726_v57  }
 0x36d   : > { %1542 = vperm.xlu1 %2734, %v1497_v58  }
 0x36e   : > { %1756 = vperm.xlu0 %2733, %v1727_v59   ;;  %1545 = vperm.xlu2 %2735, %v1498_v60  }
 0x375   : > { %1780 = vperm.xlu1 %2734, %v1735_v61  }
 0x376   : > { %1777 = vperm.xlu0 %2733, %v1734_v29   ;;  %1518 = vperm.xlu2 %2735, %v1489_v62  }
 0x37d   : > { %1759 = vperm.xlu1 %2734, %v1728_v63  }
 0x37e   : > { %1521 = vperm.xlu0 %2733, %v1490_v0   ;;  %1762 = vperm.xlu2 %2735, %v1729_v1  }
 0x385   : > { %1551 = vperm.xlu1 %2734, %v1500_v2  }
 0x386   : > { %1548 = vperm.xlu0 %2733, %v1499_v3   ;;  %1783 = vperm.xlu2 %2735, %v1736_v4  }
 0x38d   : > { %1524 = vperm.xlu1 %2734, %v1491_v5  }
 0x38e   : > { %1786 = vperm.xlu0 %2733, %v1737_v6   ;;  %1527 = vperm.xlu2 %2735, %v1492_v7  }
 0x395   : > { %1768 = vperm.xlu1 %2734, %v1731_v8  }
 0x396   : > { %1765 = vperm.xlu0 %2733, %v1730_v12  }
 0x3a0   : > { %v1507_v21 = vpop.permute.xlu2 %1506 }
 0x3a1   : > { %vm1553_vm10 = vcmp.eq.s32.totalorder %v3500_v23, %v1507_v21 }
 0x3a2   : > { %v2355_v25 = vsel %vm1553_vm10, 1.0, %v2948_v24 }
 0x3a8   : > { %v1510_v26 = vpop.permute.xlu2 %1509 }
 0x3a9   : > { %vm1554_vm11 = vcmp.eq.s32.totalorder %v3500_v23, %v1510_v26 }
 0x3aa   : > { %v2356_v30 = vsel %vm1554_vm11, 1.0, %v2948_v24 }
 0x3ab   : > { %v1601_v31 = vpack.c.bf16 %v2356_v30, %v2355_v25 }
 0x3ad   : > { %2371 = vmatmul.msk.bf16.vlgmr.msra.gmra.mxu0 %vm1616_vm12, %v1601_v31 }
 0x3b0   : > { %v1537_v32 = vpop.permute.xlu2 %1536 }
 0x3b1   : > { %vm1563_vm5 = vcmp.eq.s32.totalorder %v3500_v23, %v1537_v32 }
 0x3b2   : > { %v2365_v53 = vsel %vm1563_vm5, 1.0, %v2948_v24 }
 0x3b7   : > { %v1531_v33 = vpop.permute.xlu1 %1530 }
 0x3b8   : > { %v1742_v35 = vpop.permute.xlu0 %1741  ;;  %vm1561_vm13 = vcmp.eq.s32.totalorder %v3500_v23, %v1531_v33  ;;  %v1775_v37 = vpop.permute.xlu2 %1774 }
 0x3b9   : > { %vm1788_vm14 = vcmp.eq.s32.totalorder %v3508_v27, %v1742_v35  ;;  %v2363_v40 = vsel %vm1561_vm13, 1.0, %v2948_v24  ;;  %vm1799_vm4 = vcmp.eq.s32.totalorder %v3508_v27, %v1775_v37 }
 0x3ba   : > { %v2379_v42 = vsel %vm1788_vm14, 1.0, %v2948_v24  ;;  %v2390_v51 = vsel %vm1799_vm4, 1.0, %v2948_v24 }
 0x3bf   : > { %v1534_v38 = vpop.permute.xlu1 %1533 }
 0x3c0   : > { %v1745_v39 = vpop.permute.xlu0 %1744  ;;  %vm1562_vm15 = vcmp.eq.s32.totalorder %v3500_v23, %v1534_v38  ;;  %v1754_v48 = vpop.permute.xlu2 %1753 }
 0x3c1   : > { %vm1789_vm0 = vcmp.eq.s32.totalorder %v3508_v27, %v1745_v39  ;;  %v2364_v41 = vsel %vm1562_vm15, 1.0, %v2948_v24  ;;  %vm1792_vm11 = vcmp.eq.s32.totalorder %v3508_v27, %v1754_v48 }
 0x3c2   : > { %v2380_v43 = vsel %vm1789_vm0, 1.0, %v2948_v24  ;;  %v1605_v44 = vpack.c.bf16 %v2364_v41, %v2363_v40  ;;  %v2383_v4 = vsel %vm1792_vm11, 1.0, %v2948_v24 }
 0x3c3   : > { %v1836_v45 = vpack.c.bf16 %v2380_v43, %v2379_v42 }
 0x3c4   : > { %2375 = vmatmul.msk.bf16.vlgmr.msra.gmra.mxu2 %vm1616_vm12, %v1605_v44 }
 0x3c5   : > { %2395 = vmatmul.msk.bf16.vlgmr.msra.gmra.mxu1 %vm1848_vm1, %v1836_v45 }
 0x3c7   : > { %v1751_v46 = vpop.permute.xlu1 %1750 }
 0x3c8   : > { %v1748_v47 = vpop.permute.xlu0 %1747  ;;  %vm1791_vm3 = vcmp.eq.s32.totalorder %v3508_v27, %v1751_v46  ;;  %v1546_v57 = vpop.permute.xlu2 %1545 }
 0x3c9   : > { %vm1790_vm2 = vcmp.eq.s32.totalorder %v3508_v27, %v1748_v47  ;;  %v2382_v34 = vsel %vm1791_vm3, 1.0, %v2948_v24  ;;  %vm1566_vm10 = vcmp.eq.s32.totalorder %v3500_v23, %v1546_v57 }
 0x3ca   : > { %v2381_v50 = vsel %vm1790_vm2, 1.0, %v2948_v24  ;;  %v2368_v2 = vsel %vm1566_vm10, 1.0, %v2948_v24 }
 0x3cb   : > { %v1837_v56 = vpack.c.bf16 %v2382_v34, %v2381_v50 }
 0x3cf   : > { %v1772_v49 = vpop.permute.xlu1 %1771 }
 0x3d0   : > { %v1540_v36 = vpop.permute.xlu0 %1539  ;;  %vm1798_vm6 = vcmp.eq.s32.totalorder %v3508_v27, %v1772_v49  ;;  %v1519_v63 = vpop.permute.xlu2 %1518 }
 0x3d1   : > { %vm1564_vm7 = vcmp.eq.s32.totalorder %v3500_v23, %v1540_v36  ;;  %v2389_v52 = vsel %vm1798_vm6, 1.0, %v2948_v24  ;;  %vm1557_vm3 = vcmp.eq.s32.totalorder %v3500_v23, %v1519_v63 }
 0x3d2   : > { %v2366_v54 = vsel %vm1564_vm7, 1.0, %v2948_v24  ;;  %v1841_v55 = vpack.c.bf16 %v2390_v51, %v2389_v52  ;;  %v2359_v10 = vsel %vm1557_vm3, 1.0, %v2948_v24 }
 0x3d3   : > { %v1606_v58 = vpack.c.bf16 %v2366_v54, %v2365_v53 }
 0x3d4   : > { %2400 = vmatmul.msk.bf16.vlgmr.msra.gmra.mxu3 %vm1848_vm1, %v1841_v55 }
 0x3d5   : > { %2376 = vmatmul.msk.bf16.gmra.mxu2 %vm1616_vm12, %v1606_v58  ;;  %2396 = vmatmul.msk.bf16.gmra.mxu1 %vm1848_vm1, %v1837_v56 }
 0x3d7   : > { %v1516_v59 = vpop.permute.xlu1 %1515 }
 0x3d8   : > { %vm1556_vm8 = vcmp.eq.s32.totalorder %v3500_v23, %v1516_v59  ;;  %v1513_v60 = vpop.permute.xlu0 %1512  ;;  %v1763_v8 = vpop.permute.xlu2 %1762 }
 0x3d9   : > { %v2358_v61 = vsel %vm1556_vm8, 1.0, %v2948_v24  ;;  %vm1555_vm9 = vcmp.eq.s32.totalorder %v3500_v23, %v1513_v60  ;;  %vm1795_vm2 = vcmp.eq.s32.totalorder %v3508_v27, %v1763_v8 }
 0x3da   : > { %v2357_v29 = vsel %vm1555_vm9, 1.0, %v2948_v24  ;;  %v2386_v17 = vsel %vm1795_vm2, 1.0, %v2948_v24 }
 0x3db   : > { %v1602_v62 = vpack.c.bf16 %v2358_v61, %v2357_v29 }
 0x3dd   : > { %2372 = vmatmul.msk.bf16.gmra.mxu0 %vm1616_vm12, %v1602_v62 }
 0x3df   : > { %v1543_v0 = vpop.permute.xlu1 %1542 }
 0x3e0   : > { %vm1565_vm13 = vcmp.eq.s32.totalorder %v3500_v23, %v1543_v0  ;;  %v1757_v1 = vpop.permute.xlu0 %1756  ;;  %v1784_v18 = vpop.permute.xlu2 %1783 }
 0x3e1   : > { %v2367_v3 = vsel %vm1565_vm13, 1.0, %v2948_v24  ;;  %vm1793_vm14 = vcmp.eq.s32.totalorder %v3508_v27, %v1757_v1  ;;  %vm1802_vm9 = vcmp.eq.s32.totalorder %v3508_v27, %v1784_v18 }
 0x3e2   : > { %v1607_v5 = vpack.c.bf16 %v2368_v2, %v2367_v3  ;;  %v2384_v6 = vsel %vm1793_vm14, 1.0, %v2948_v24  ;;  %v2393_v39 = vsel %vm1802_vm9, 1.0, %v2948_v24 }
 0x3e3   : > { %v1838_v7 = vpack.c.bf16 %v2384_v6, %v2383_v4 }
 0x3e5   : > { %2377 = vmatmul.msk.bf16.gmra.mxu2 %vm1616_vm12, %v1607_v5  ;;  %2397 = vmatmul.msk.bf16.gmra.mxu1 %vm1848_vm1, %v1838_v7 }
 0x3e7   : > { %v1781_v9 = vpop.permute.xlu1 %1780 }
 0x3e8   : > { %vm1801_vm15 = vcmp.eq.s32.totalorder %v3508_v27, %v1781_v9  ;;  %v1778_v11 = vpop.permute.xlu0 %1777  ;;  %v1528_v32 = vpop.permute.xlu2 %1527 }
 0x3e9   : > { %v2392_v12 = vsel %vm1801_vm15, 1.0, %v2948_v24  ;;  %vm1800_vm0 = vcmp.eq.s32.totalorder %v3508_v27, %v1778_v11  ;;  %vm1560_vm8 = vcmp.eq.s32.totalorder %v3500_v23, %v1528_v32 }
 0x3ea   : > { %v2391_v13 = vsel %vm1800_vm0, 1.0, %v2948_v24  ;;  %v2362_v37 = vsel %vm1560_vm8, 1.0, %v2948_v24 }
 0x3eb   : > { %v1842_v14 = vpack.c.bf16 %v2392_v12, %v2391_v13 }
 0x3ed   : > { %2401 = vmatmul.msk.bf16.gmra.mxu3 %vm1848_vm1, %v1842_v14 }
 0x3ef   : > { %v1760_v15 = vpop.permute.xlu1 %1759 }
 0x3f0   : > { %vm1794_vm4 = vcmp.eq.s32.totalorder %v3508_v27, %v1760_v15  ;;  %v1522_v16 = vpop.permute.xlu0 %1521 }
 0x3f1   : > { %v2385_v19 = vsel %vm1794_vm4, 1.0, %v2948_v24  ;;  %vm1558_vm5 = vcmp.eq.s32.totalorder %v3500_v23, %v1522_v16 }
 0x3f2   : > { %v1839_v20 = vpack.c.bf16 %v2386_v17, %v2385_v19  ;;  %v2360_v21 = vsel %vm1558_vm5, 1.0, %v2948_v24 }
 0x3f3   : > { %v1603_v22 = vpack.c.bf16 %v2360_v21, %v2359_v10 }
 0x3f5   : > { %2373 = vmatmul.msk.bf16.gmra.mxu0 %vm1616_vm12, %v1603_v22  ;;  %2398 = vmatmul.msk.bf16.gmra.mxu1 %vm1848_vm1, %v1839_v20 }
 0x3f7   : > { %v1552_v25 = vpop.permute.xlu1 %1551 }
 0x3f8   : > { %vm1568_vm6 = vcmp.eq.s32.totalorder %v3500_v23, %v1552_v25  ;;  %v1549_v26 = vpop.permute.xlu0 %1548 }
 0x3f9   : > { %v2370_v30 = vsel %vm1568_vm6, 1.0, %v2948_v24  ;;  %vm1567_vm7 = vcmp.eq.s32.totalorder %v3500_v23, %v1549_v26 }
 0x3fa   : > { %v2369_v31 = vsel %vm1567_vm7, 1.0, %v2948_v24 }
 0x3fb   : > { %v1608_v33 = vpack.c.bf16 %v2370_v30, %v2369_v31 }
 0x3fd   : > { %2378 = vmatmul.msk.bf16.gmra.mxu2 %vm1616_vm12, %v1608_v33 }
 0x3ff   : > { %v1525_v28 = vpop.permute.xlu1 %1524 }
 0x400   : > { %vm1559_vm10 = vcmp.eq.s32.totalorder %v3500_v23, %v1525_v28  ;;  %v1787_v35 = vpop.permute.xlu0 %1786 }
 0x401   : > { %v2361_v38 = vsel %vm1559_vm10, 1.0, %v2948_v24  ;;  %vm1803_vm11 = vcmp.eq.s32.totalorder %v3508_v27, %v1787_v35 }
 0x402   : > { %v1604_v40 = vpack.c.bf16 %v2362_v37, %v2361_v38  ;;  %v2394_v41 = vsel %vm1803_vm11, 1.0, %v2948_v24 }
 0x403   : > { %v1843_v42 = vpack.c.bf16 %v2394_v41, %v2393_v39 }
 0x405   : > { %2374 = vmatmul.msk.bf16.gmra.mxu0 %vm1616_vm12, %v1604_v40  ;;  %2402 = vmatmul.msk.bf16.gmra.mxu3 %vm1848_vm1, %v1843_v42 }
 0x407   : > { %v1769_v43 = vpop.permute.xlu1 %1768 }
 0x408   : > { %vm1797_vm13 = vcmp.eq.s32.totalorder %v3508_v27, %v1769_v43  ;;  %v1766_v23 = vpop.permute.xlu0 %1765 }
 0x409   : > { %v2388_v44 = vsel %vm1797_vm13, 1.0, %v2948_v24  ;;  %vm1796_vm14 = vcmp.eq.s32.totalorder %v3508_v27, %v1766_v23 }
 0x40a   : > { %v2387_v45 = vsel %vm1796_vm14, 1.0, %v2948_v24 }
 0x40b   : > { %v1840_v46 = vpack.c.bf16 %v2388_v44, %v2387_v45 }
 0x40d   : > { %2399 = vmatmul.msk.bf16.gmra.mxu1 %vm1848_vm1, %v1840_v46 }
 0x42a   : > { %v1650_v47 = vpop.f32.mrf.mxu0 }
 0x432   : > { %v1652_v48 = vpop.f32.mrf.mxu0 }
 0x433   : > { %v2485_v49 = vpack.c.bf16 %v1652_v48, %v1650_v47 }
 0x435   : > { %2486 = vst [vmem:[%s3230_s5] sm:$0xff] %v2485_v49  }
 0x442   : > { %v1882_v50 = vpop.f32.mrf.mxu1 }
 0x447   : > { %v1670_v34 = vpop.f32.mrf.mxu2 }
 0x44a   : > { %v1884_v36 = vpop.f32.mrf.mxu1 }
 0x44b   : > { %v2525_v51 = vpack.c.bf16 %v1884_v36, %v1882_v50 }
 0x44d   : > { %2526 = vst [vmem:[%s3232_s23] sm:$0xff] %v2525_v51  }
 0x44f   : > { %v1672_v52 = vpop.f32.mrf.mxu2 }
 0x450   : > { %v2505_v53 = vpack.c.bf16 %v1672_v52, %v1670_v34 }
 0x452   : > { %2572 = vst [vmem:[%s3230_s5 + $0x20] sm:$0xff] %v2505_v53   ;;  %v1887_v27 = vpop.f32.mrf.mxu1 }
 0x457   : > { %v1907_v24 = vpop.f32.mrf.mxu3 }
 0x458   : > { %v1675_v54 = vpop.f32.mrf.mxu2 }
 0x45a   : > { %v1655_v55 = vpop.f32.mrf.mxu0  ;;  %v1889_v56 = vpop.f32.mrf.mxu1 }
 0x45b   : > { %v2530_v57 = vpack.c.bf16 %v1889_v56, %v1887_v27 }
 0x45d   : > { %2576 = vst [vmem:[%s3232_s23 + $0x8] sm:$0xff] %v2530_v57  }
 0x45f   : > { %v1909_v58 = vpop.f32.mrf.mxu3 }
 0x460   : > { %v1677_v59 = vpop.f32.mrf.mxu2  ;;  %v2550_v60 = vpack.c.bf16 %v1909_v58, %v1907_v24 }
 0x461   : > { %v2510_v61 = vpack.c.bf16 %v1677_v59, %v1675_v54 }
 0x462   : > { %2580 = vst [vmem:[%s3232_s23 + $0x28] sm:$0xff] %v2550_v60   ;;  %v1657_v29 = vpop.f32.mrf.mxu0  ;;  %v1892_v62 = vpop.f32.mrf.mxu1 }
 0x463   : > { %2573 = vst [vmem:[%s3230_s5 + $0x28] sm:$0xff] %v2510_v61   ;;  %v2490_v63 = vpack.c.bf16 %v1657_v29, %v1655_v55 }
 0x465   : > { %2569 = vst [vmem:[%s3230_s5 + $0x8] sm:$0xff] %v2490_v63  }
 0x468   : > { %v1680_v0 = vpop.f32.mrf.mxu2 }
 0x46a   : > { %v1894_v1 = vpop.f32.mrf.mxu1 }
 0x46b   : > { %v2535_v2 = vpack.c.bf16 %v1894_v1, %v1892_v62 }
 0x46d   : > { %2577 = vst [vmem:[%s3232_s23 + $0x10] sm:$0xff] %v2535_v2  }
 0x470   : > { %v1682_v3 = vpop.f32.mrf.mxu2  ;;  %v1912_v4 = vpop.f32.mrf.mxu3 }
 0x471   : > { %v2515_v5 = vpack.c.bf16 %v1682_v3, %v1680_v0 }
 0x472   : > { %v1660_v6 = vpop.f32.mrf.mxu0  ;;  %v1897_v7 = vpop.f32.mrf.mxu1 }
 0x473   : > { %2574 = vst [vmem:[%s3230_s5 + $0x30] sm:$0xff] %v2515_v5  }
 0x478   : > { %v1914_v8 = vpop.f32.mrf.mxu3 }
 0x479   : > { %v2555_v9 = vpack.c.bf16 %v1914_v8, %v1912_v4 }
 0x47a   : > { %v1662_v11 = vpop.f32.mrf.mxu0  ;;  %v1899_v12 = vpop.f32.mrf.mxu1 }
 0x47b   : > { %2581 = vst [vmem:[%s3232_s23 + $0x30] sm:$0xff] %v2555_v9   ;;  %v2495_v13 = vpack.c.bf16 %v1662_v11, %v1660_v6  ;;  %v2540_v14 = vpack.c.bf16 %v1899_v12, %v1897_v7 }
 0x47d   : > { %2570 = vst [vmem:[%s3230_s5 + $0x10] sm:$0xff] %v2495_v13  }
 0x47e   : > { %2578 = vst [vmem:[%s3232_s23 + $0x18] sm:$0xff] %v2540_v14  }
 0x480   : > { %v1685_v15 = vpop.f32.mrf.mxu2 }
 0x482   : > { %v1665_v16 = vpop.f32.mrf.mxu0 }
 0x488   : > { %v1687_v17 = vpop.f32.mrf.mxu2  ;;  %v1917_v18 = vpop.f32.mrf.mxu3 }
 0x489   : > { %v2520_v19 = vpack.c.bf16 %v1687_v17, %v1685_v15 }
 0x48a   : > { %v1667_v10 = vpop.f32.mrf.mxu0  ;;  %v1902_v20 = vpop.f32.mrf.mxu1 }
 0x48b   : > { %2575 = vst [vmem:[%s3230_s5 + $0x38] sm:$0xff] %v2520_v19   ;;  %v2500_v21 = vpack.c.bf16 %v1667_v10, %v1665_v16 }
 0x48d   : > { %2571 = vst [vmem:[%s3230_s5 + $0x18] sm:$0xff] %v2500_v21  }
 0x490   : > { %v1919_v22 = vpop.f32.mrf.mxu3 }
 0x491   : > { %v2560_v25 = vpack.c.bf16 %v1919_v22, %v1917_v18 }
 0x492   : > { %v1904_v26 = vpop.f32.mrf.mxu1 }
 0x493   : > { %2582 = vst [vmem:[%s3232_s23 + $0x38] sm:$0xff] %v2560_v25   ;;  %v2545_v30 = vpack.c.bf16 %v1904_v26, %v1902_v20 }
 0x495   : > { %2579 = vst [vmem:[%s3232_s23 + $0x20] sm:$0xff] %v2545_v30  }
 0x496 PF: > { %s3818_s16 = sadd.s32 4294967295, %s2940_s25   ;;  %s3819_s18 = ssub.s32 1, %s2928_s22 }
 0x497   : > { %s3603_s14 = sand.u32 1, %s3818_s16   ;;  %s1995_s19 = smul.u32 3, %s3819_s18 }
 0x498   : > { %s2002_s2 = sshll.u32 %s3230_s5, 4  ;;  %s1974_s8 = smul.u32 3, %s2928_s22  ;;  %s3608_s2 = int_to_ptr.vmem [resolvable:$true] %s2002_s2 }
 0x499   : > { %s1996_s29 = sadd.s32 %s1995_s19, %s3190_s15  ;;  %s1981_s7 = sshll.u32 %s3228_s24, 4  ;;  %s1982_s7 = int_to_ptr.vmem [resolvable:$true] %s1981_s7 }
 0x49a   : > { %s2440_s21 = sshll.u32 %s1996_s29, 6  ;;  %s3820_s0 = sld [smem:[#allocation45_spill]] }
 0x49b   : > { %s3821_s3 = sld [smem:[#allocation46_spill]]  ;;  %s1975_s5 = sadd.s32 %s1974_s8, %s3183_s13 }
 0x49c   : > { %s1960_s18 = scalar_lea.sflag [#allocation12], %s3603_s14 }
 0x4a0   : > { %s2001_s17 = scalar_lea.hbm %s3820_s0, %s2440_s21  ;;  %s2780_s19 = scalar_lea.hbm %s3820_s0, 256 }
 0x4a1   : > { %s2022_s4 = scalar_lea.hbm %s3821_s3, %s2440_s21  ;;  %s2004_s10 = sshll.u32 %s2001_s17, 4  ;;  %s2005_s10 = int_to_ptr.hbm [resolvable:$true] %s2004_s10 }
 0x4a2   : > { %s3619_s16 = sshll.u32 %s2022_s4, 4  ;;  %s2774_s6 = sshra.s32 %s2005_s10, 4  ;;  %s2775_s6 = int_to_ptr.hbm [resolvable:$true] %s2774_s6  ;;  %s2026_s16 = int_to_ptr.hbm [resolvable:$true] %s3619_s16 }
 0x4a3   : > { %s2776_s15 = scalar_lea.hbm %s2775_s6, 64  ;;  %p2781_p8 = scmp.lt.s32.totalorder %s2775_s6, %s3820_s0 }
 0x4a4   : > { %p2777_p3 = scmp.ne.s32.totalorder %s2775_s6, %s2776_s15  ;;  %p2782_p9 = scmp.lt.s32.totalorder %s2780_s19, %s2776_s15 }
 0x4a6   : > { %p2778_p4 = pnand %p2777_p3, %p3158_p10  ;;  %p2783_p11 = por %p2782_p9, %p2781_p8 }
 0x4a8   : > { %p2779_p6 = pneg %p2778_p4 }
 0x4aa   : > { %p2784_p12 = pnand %p2783_p11, %p2779_p6 }
 0x4ac   : > { %2787 = shalt.err (!%p2784_p12)
}
 0x4ad   : > { %s2949_s13 = smov 64   ;;  %s2950_s21 = smov 4  }
 0x4ae   : > { %2612 = dma.vmem_to_hbm [thread:$0]  (%p3158_p10), %s3608_s2, 1024, %s2005_s10, %s1960_s18, %s2949_s13, %s2949_s13, %s2950_s21  }
 0x4af   : > { %s2439_s6 = sshll.u32 %s1975_s5, 6  ;;  %s3823_s12 = sld [smem:[#allocation44_spill]] }
 0x4b0   : > { %s2023_s4 = sshll.u32 %s3232_s23, 4  ;;  %s3824_s22 = sand.u32 1, %s2916_s20   ;;  %s3643_s4 = int_to_ptr.vmem [resolvable:$true] %s2023_s4 }
 0x4b1   : > { %s1955_s24 = scalar_lea.sflag [#allocation10], %s3824_s22 }
 0x4b5   : > { %s1980_s26 = scalar_lea.hbm %s3823_s12, %s2439_s6  ;;  %s2808_s5 = scalar_lea.hbm %s3823_s12, 256 }
 0x4b6   : > { %s1983_s15 = sshll.u32 %s1980_s26, 4  ;;  %s1984_s15 = int_to_ptr.hbm [resolvable:$true] %s1983_s15 }
 0x4b7   : > { %s2802_s19 = sshra.s32 %s1984_s15, 4  ;;  %s2803_s19 = int_to_ptr.hbm [resolvable:$true] %s2802_s19 }
 0x4b8   : > { %s2804_s29 = scalar_lea.hbm %s2803_s19, 64  ;;  %p2809_p3 = scmp.lt.s32.totalorder %s2803_s19, %s3823_s12 }
 0x4b9   : > { %p2805_p13 = scmp.ne.s32.totalorder %s2803_s19, %s2804_s29  ;;  %p2810_p4 = scmp.lt.s32.totalorder %s2808_s5, %s2804_s29 }
 0x4bb   : > { %p2806_p1 = pnand %p2805_p13, %p3127_p5  ;;  %p2811_p6 = por %p2810_p4, %p2809_p3 }
 0x4bd   : > { %p2807_p2 = pneg %p2806_p1 }
 0x4bf   : > { %p2812_p8 = pnand %p2811_p6, %p2807_p2 }
 0x4c1   : > { %2815 = shalt.err (!%p2812_p8)
}
 0x4c2   : > { %2611 = dma.vmem_to_hbm [thread:$0]  (%p3127_p5), %s1982_s7, 1024, %s1984_s15, %s1955_s24, %s2949_s13, %s2949_s13, %s2950_s21  }
 0x4c3   : > { %s2830_s6 = sshra.s32 %s2026_s16, 4  ;;  %s2836_s22 = scalar_lea.hbm %s3821_s3, 256  ;;  %s2831_s6 = int_to_ptr.hbm [resolvable:$true] %s2830_s6 }
 0x4c4   : > { %s2832_s27 = scalar_lea.hbm %s2831_s6, 64  ;;  %p2837_p13 = scmp.lt.s32.totalorder %s2831_s6, %s3821_s3 }
 0x4c5   : > { %p2833_p9 = scmp.ne.s32.totalorder %s2831_s6, %s2832_s27  ;;  %p2838_p1 = scmp.lt.s32.totalorder %s2836_s22, %s2832_s27 }
 0x4c7   : > { %p2834_p11 = pnand %p2833_p9, %p3158_p10  ;;  %p2839_p2 = por %p2838_p1, %p2837_p13 }
 0x4c9   : > { %p2835_p12 = pneg %p2834_p11 }
 0x4cb   : > { %p2840_p3 = pnand %p2839_p2, %p2835_p12 }
 0x4cd   : > { %2843 = shalt.err (!%p2840_p3)
}
 0x4ce   : > { %2613 = dma.vmem_to_hbm [thread:$0]  (%p3158_p10), %s3643_s4, 1024, %s2026_s16, %s1960_s18, %s2949_s13, %s2949_s13, %s2950_s21  }
 0x4cf PF: > { %s3825_s7 = sld [smem:[#allocation19_spill]]  ;;  %p2627_p5 = scmp.ge.s32.totalorder %s2940_s25, 2 }
 0x4d1   : > { %p2618_p4 = pnand %p2627_p5, %p3142_p7 }
 0x4d3   : > { %p2619_p6 = pneg %p2618_p4 }
 0x4d5   : > { %s2040_s24 = sand.u32 1, %s3825_s7  }
 0x4d6   : > { %s2041_s29 = scalar_lea.sflag [#allocation10], %s2040_s24 }
 0x4d7   : > { %2891 = dma.done.wait (%p2619_p6), %s2041_s29, 1024  }
 0x4d8   : > { %2893 = vsyncadd (%p2619_p6), %s2041_s29, 4294966272  ;;  %s3827_s9 = sadd.s32 4294967294, %s2940_s25   ;;  %p2621_p8 = pnand %p2627_p5, %p3167_p0 }
 0x4d9   : > { %s2050_s14 = sand.u32 1, %s3827_s9  }
 0x4da   : > { %p2622_p9 = pneg %p2621_p8  ;;  %s2051_s16 = scalar_lea.sflag [#allocation12], %s2050_s14 }
 0x4dc   : > { %2895 = dma.done.wait (%p2622_p9), %s2051_s16, 2048  }
 0x4dd   : > { %2897 = vsyncadd (%p2622_p9), %s2051_s16, 4294965248  ;;  %s47_s25 = sadd.s32 1, %s2940_s25   ;;  %s3829_s18 = sld [smem:[#allocation17_spill]] }
 0x4de   : > { %p44_p10 = scmp.ge.s32.totalorder %s47_s25, 8   ;;  %s3830_s19 = sld [smem:[#allocation18_spill]] }
 0x4df   : > { %s3831_s2 = sld [smem:[#allocation29_spill]]  ;;  %s3838_s1 = smov %s2916_s20 }
 0x4e0   : > { %s3832_s13 = sld [smem:[#allocation20_spill]] }
 0x4e1   : > { %s3833_s10 = sld [smem:[#allocation27_spill]] }
 0x4e2   : > { %s3834_s21 = sld [smem:[#allocation21_spill]]  ;;  %46 = sbr.rel (!%p44_p10) target bundleno = 39 (0x27), region = 171 }
 0x4e3   : > { %s3835_s22 = sld [smem:[#allocation22_spill]] }
 0x4e4   : > { %s3836_s23 = sld [smem:[#allocation23_spill]] }
 0x4e5   : > { %s3837_s24 = sld [smem:[#allocation24_spill]] }
 0x4e6   : > { %s3839_s20 = smov %s3832_s13 }
 0x4e7   :  { %2067 = vsyncpa [#allocation10], 1 }
 0x4e8   :  { %2069 = vsyncpa [#allocation10 + $0x1], 1 }
 0x4e9   :  { %2070 = vsyncpa [#allocation12], 1 }
 0x4ea   :  { %2072 = vsyncpa [#allocation12 + $0x1], 1 }

</bundles_post_ra>
